<compile_context>
chip_gen: v7x
topology: tpu7x:2x2x1
jax: 0.10.0
libtpu: 0.0.40
codegen_flags: <defaults>
</compile_context>

<pallas_src>
import math
from functools import partial

import jax
import jax.numpy as jnp
from jax import lax
from jax.experimental import pallas as pl
from jax.experimental.pallas import tpu as pltpu


def _vmem_limit_bytes():
    """Generation-aware scoped-VMEM limit: ~3/4 of physical, capped at 96 MiB.
    v5e/v6e (128 MiB physical) -> 96 MiB; v7x (64 MiB per TC) -> 48 MiB."""
    try:
        cap = int(pltpu.get_tpu_info().vmem_capacity_bytes)
    except Exception:
        cap = 64 * 1024 * 1024          # conservative fallback (v7x-safe)
    return max(32 * 1024 * 1024, min((cap * 3) // 4, 96 * 1024 * 1024))


_VMEM_LIMIT = _vmem_limit_bytes()


def _pick_tile(dim, preferred, align):
    """Largest divisor of `dim` that is <= preferred and a multiple of `align`.
    Falls back to the full dim (a full-extent block is always legal)."""
    if dim <= preferred:
        return dim
    t = (preferred // align) * align
    while t >= align:
        if dim % t == 0:
            return t
        t -= align
    return dim


# ----------------------------------------------------------------------------
# Stacked tiled linear: out[p] = x @ w3[p] + b3[p]
# (bf16 operands, f32 accumulation, reduction axis last in the grid)
# ----------------------------------------------------------------------------
def _linear3_kernel(x_ref, w_ref, b_ref, o_ref, acc_ref):
    k = pl.program_id(3)

    @pl.when(k == 0)
    def _():
        acc_ref[...] = jnp.zeros_like(acc_ref)

    acc_ref[...] += jnp.dot(x_ref[...], w_ref[0],
                            preferred_element_type=jnp.float32)

    @pl.when(k == pl.num_programs(3) - 1)
    def _():
        o_ref[0] = (acc_ref[...] + b_ref[0]).astype(o_ref.dtype)


def _linear3(x2d, w3, b3, *, out_dtype,
             tm_pref=512, tn_pref=512, tk_pref=1024):
    """x2d: (M, K) bf16; w3: (P, K, N) bf16; b3: (P, 1, N) f32
    -> (P, M, N) = x2d @ w3[p] + b3[p], in out_dtype."""
    M, K = x2d.shape
    P, _, N = w3.shape
    tm = _pick_tile(M, tm_pref, 16)
    tn = _pick_tile(N, tn_pref, 128)
    tk = _pick_tile(K, tk_pref, 128)

    return pl.pallas_call(
        _linear3_kernel,
        out_shape=jax.ShapeDtypeStruct((P, M, N), out_dtype),
        grid_spec=pltpu.PrefetchScalarGridSpec(
            num_scalar_prefetch=0,
            grid=(P, M // tm, N // tn, K // tk),
            in_specs=[
                pl.BlockSpec((tm, tk), lambda p, i, j, k: (i, k)),        # x
                pl.BlockSpec((1, tk, tn), lambda p, i, j, k: (p, k, j)),  # w
                pl.BlockSpec((1, 1, tn), lambda p, i, j, k: (p, 0, j)),   # b
            ],
            out_specs=pl.BlockSpec((1, tm, tn),
                                   lambda p, i, j, k: (p, i, j)),
            scratch_shapes=[pltpu.VMEM((tm, tn), jnp.float32)],
        ),
        compiler_params=pltpu.CompilerParams(
            dimension_semantics=("parallel", "parallel", "parallel",
                                 "arbitrary"),
            vmem_limit_bytes=_VMEM_LIMIT),
    )(x2d, w3, b3)


# ----------------------------------------------------------------------------
# Flash attention: grid (B, head_groups, q_tile, kv_tile), online softmax.
# Reads Q/K/V directly out of the stacked (3, B, S, D) qkv array; writes the
# output already merged to (B, S, D).
# ----------------------------------------------------------------------------
def _flash_kernel(q_ref, k_ref, v_ref, o_ref, qs_ref, m_sc, l_sc, acc_sc,
                  *, scale, causal, tq, tk, hb, dh):
    qi = pl.program_id(2)
    ki = pl.program_id(3)

    @pl.when(ki == 0)
    def _init():
        m_sc[...] = jnp.full_like(m_sc, -jnp.inf)
        l_sc[...] = jnp.zeros_like(l_sc)
        acc_sc[...] = jnp.zeros_like(acc_sc)
        # Hoist the 1/sqrt(d_head) scaling and bf16 cast of Q out of the kv
        # loop: done once per q tile, reused for every kv step.
        qs_ref[...] = (q_ref[0, 0].astype(jnp.float32) * scale
                       ).astype(jnp.bfloat16)

    def _step(apply_mask):
        q_all = qs_ref[...]                       # (tq, hb*dh) bf16, pre-scaled
        k_all = k_ref[0, 0]                       # (tk, hb*dh) bf16
        v_all = v_ref[0, 0]                       # (tk, hb*dh) bf16
        if apply_mask:
            row = qi * tq + lax.broadcasted_iota(jnp.int32, (tq, tk), 0)
            col = ki * tk + lax.broadcasted_iota(jnp.int32, (tq, tk), 1)
            neg = jnp.where(col > row, -jnp.inf, 0.0).astype(jnp.float32)
        for h in range(hb):                       # static unroll: packed heads
            sl = slice(h * dh, (h + 1) * dh)
            # Scores (tq, tk): lane-dense; K consumed untransposed.
            s = lax.dot_general(q_all[:, sl], k_all[:, sl],
                                (((1,), (1,)), ((), ())),
                                preferred_element_type=jnp.float32)
            if apply_mask:
                s = s + neg
            m_prev = m_sc[:, h:h + 1]
            m_new = jnp.maximum(m_prev, s.max(axis=-1, keepdims=True))
            # Guard: rows with no visible key yet keep m == -inf; avoid
            # exp(-inf - (-inf)) = NaN.
            m_safe = jnp.where(m_new == -jnp.inf, 0.0, m_new)
            alpha = jnp.exp(m_prev - m_safe)
            p = jnp.exp(s - m_safe)
            l_sc[:, h:h + 1] = (alpha * l_sc[:, h:h + 1]
                                + p.sum(axis=-1, keepdims=True))
            acc_sc[:, sl] = alpha * acc_sc[:, sl] + jnp.dot(
                p.astype(jnp.bfloat16), v_all[:, sl],
                preferred_element_type=jnp.float32)
            m_sc[:, h:h + 1] = m_new

    if causal:
        visible = ki * tk <= qi * tq + (tq - 1)    # not fully masked
        crosses = ki * tk + (tk - 1) > qi * tq     # crosses the diagonal
        # Split masked / unmasked compute paths: fully-visible tiles skip the
        # iota mask; fully-masked tiles skip compute entirely (their K/V DMAs
        # are already elided by the clamped index_map).
        pl.when(jnp.logical_and(visible, crosses))(lambda: _step(True))
        pl.when(jnp.logical_and(visible, jnp.logical_not(crosses)))(
            lambda: _step(False))
    else:
        _step(False)

    @pl.when(ki == pl.num_programs(3) - 1)
    def _finalize():
        acc = acc_sc[...]
        inv_l = pl.reciprocal(l_sc[...], approx=True)          # (tq, hb)
        parts = [acc[:, h * dh:(h + 1) * dh] * inv_l[:, h:h + 1]
                 for h in range(hb)]
        # Single lane-dense store of the whole (tq, hb*dh) output block.
        o_ref[0] = jnp.concatenate(parts, axis=-1).astype(o_ref.dtype)


def _flash_attention(qkv3, *, n_heads, causal, out_dtype):
    """qkv3: (3, B, S, D) bf16 (Q/K/V stacked). Returns (B, S, D) with the
    heads already merged (head h occupies columns [h*dh, (h+1)*dh))."""
    _, B, S, D = qkv3.shape
    dh = D // n_heads

    # Head packing: smallest head group whose column width is lane-aligned
    # (multiple of 128); otherwise all heads (full-D block, always legal).
    hb = n_heads
    for grp in range(1, n_heads + 1):
        if n_heads % grp == 0 and (grp * dh) % 128 == 0:
            hb = grp
            break
    cb = hb * dh
    nhb = n_heads // hb

    # kv tile lane-aligned to 128; q tile sized so the per-step (hb, tq, tk)
    # score tile stays within a ~1 MiB f32 budget (limits vreg/VMEM pressure).
    tk = _pick_tile(S, 256 if hb == 1 else 128, 128)
    budget = 256 * 1024
    tq_pref = max(min(256, budget // (hb * tk)), 16)
    tq = _pick_tile(S, tq_pref, 16)
    nq, nk = S // tq, S // tk
    scale = 1.0 / math.sqrt(dh)

    def q_map(b, g, qi, ki):
        return (0, b, qi, g)

    def kv_map(plane):
        def index(b, g, qi, ki):
            if causal:
                # Clamp: past the last visible kv tile for this q tile the
                # block index stops changing, so Pallas elides the DMA.
                ki = jnp.minimum(ki, (qi * tq + (tq - 1)) // tk)
            return (plane, b, ki, g)
        return index

    kernel = partial(_flash_kernel, scale=scale, causal=causal,
                     tq=tq, tk=tk, hb=hb, dh=dh)

    return pl.pallas_call(
        kernel,
        out_shape=jax.ShapeDtypeStruct((B, S, D), out_dtype),
        grid_spec=pltpu.PrefetchScalarGridSpec(
            num_scalar_prefetch=0,
            grid=(B, nhb, nq, nk),
            in_specs=[
                pl.BlockSpec((1, 1, tq, cb), q_map),       # Q   (plane 0)
                pl.BlockSpec((1, 1, tk, cb), kv_map(1)),   # K   (plane 1)
                pl.BlockSpec((1, 1, tk, cb), kv_map(2)),   # V   (plane 2)
            ],
            out_specs=pl.BlockSpec((1, tq, cb),
                                   lambda b, g, qi, ki: (b, qi, g)),
            scratch_shapes=[
                pltpu.VMEM((tq, cb), jnp.bfloat16),   # pre-scaled Q
                pltpu.VMEM((tq, hb), jnp.float32),    # running max per head
                pltpu.VMEM((tq, hb), jnp.float32),    # running sum per head
                pltpu.VMEM((tq, cb), jnp.float32),    # output accumulator
            ],
        ),
        compiler_params=pltpu.CompilerParams(
            dimension_semantics=("parallel", "parallel", "parallel",
                                 "arbitrary"),
            vmem_limit_bytes=_VMEM_LIMIT),
    )(qkv3, qkv3, qkv3)


# ----------------------------------------------------------------------------
# Full module forward
# ----------------------------------------------------------------------------
@partial(jax.jit, static_argnames=("n_heads", "causal_mask"))
def self_attention(x, w_in, b_in, w_out, b_out, *, n_heads,
                   causal_mask=False):
    """x: (B, S, D); w_in: (D, 3D); b_in: (3D,); w_out: (D, D); b_out: (D,).
    Weights are stored transposed relative to torch.nn.Linear (y = x @ W + b)."""
    B, S, D = x.shape
    assert D % n_heads == 0
    out_dtype = x.dtype

    # One-time weight prep (weight-sized work only): stack the Q/K/V panels of
    # w_in on a leading axis so the in_proj GEMM emits (3, B*S, D) directly;
    # cast weights/activations to bf16, keep biases f32.
    w3 = w_in.reshape(D, 3, D).transpose(1, 0, 2).astype(jnp.bfloat16)  # (3,D,D)
    b3 = b_in.reshape(3, 1, D).astype(jnp.float32)
    w_o = w_out.reshape(1, D, D).astype(jnp.bfloat16)
    b_o = b_out.reshape(1, 1, D).astype(jnp.float32)
    xb = x.reshape(B * S, D).astype(jnp.bfloat16)

    # 1) in_proj GEMM -> (3, B*S, D) bf16 (no XLA head split afterwards).
    qkv3 = _linear3(xb, w3, b3, out_dtype=jnp.bfloat16)
    qkv3 = qkv3.reshape(3, B, S, D)                        # free reshape

    # 2) flash attention; output already in merged-head (B, S, D) layout.
    o = _flash_attention(qkv3, n_heads=n_heads, causal=causal_mask,
                         out_dtype=jnp.bfloat16)

    # 3) out_proj GEMM; cast back to the input dtype.
    y = _linear3(o.reshape(B * S, D), w_o, b_o, out_dtype=out_dtype)
    return y.reshape(B, S, D)


def _reference(x, w_in, b_in, w_out, b_out, n_heads, causal_mask=False):
    """Pure-JAX mirror of the PyTorch forward for validation."""
    B, S, D = x.shape
    dh = D // n_heads
    qkv = x @ w_in + b_in
    q, k, v = jnp.split(qkv, 3, axis=-1)

    def heads(t):
        return t.reshape(B, S, n_heads, dh).transpose(0, 2, 1, 3)

    q, k, v = heads(q), heads(k), heads(v)
    w = jnp.einsum("bhqd,bhkd->bhqk", q, k)
    if causal_mask:
        row = jnp.arange(S)[:, None]
        col = jnp.arange(S)[None, :]
        w = jnp.where(col > row, -jnp.inf, w)
    w = w / math.sqrt(dh)
    w = jax.nn.softmax(w, axis=-1)
    o = jnp.einsum("bhqk,bhkd->bhqd", w, v)
    o = o.transpose(0, 2, 1, 3).reshape(B, S, D)
    return o @ w_out + b_out


if __name__ == "__main__":
    # Small shapes consistent with the module: batch=2, seq=8, d_embed=32, 4 heads.
    B, S, D, H = 2, 8, 32, 4

    key = jax.random.PRNGKey(0)
    kx, k1, k2, k3, k4 = jax.random.split(key, 5)

    x = jax.random.normal(kx, (B, S, D), dtype=jnp.float32)

    bound = 1.0 / math.sqrt(D)
    w_in = jax.random.uniform(k1, (D, 3 * D), jnp.float32, -bound, bound)
    b_in = jax.random.uniform(k2, (3 * D,), jnp.float32, -bound, bound)
    w_out = jax.random.uniform(k3, (D, D), jnp.float32, -bound, bound)
    b_out = jax.random.uniform(k4, (D,), jnp.float32, -bound, bound)

    out = jax.block_until_ready(
        self_attention(x, w_in, b_in, w_out, b_out, n_heads=H,
                       causal_mask=False))
    ref = _reference(x, w_in, b_in, w_out, b_out, H, causal_mask=False)
    assert out.shape == (B, S, D)
    # bf16 operands with f32 accumulation -> loosened tolerance.
    assert jnp.allclose(out, ref, atol=5e-2, rtol=5e-2), "mismatch vs reference"

    # Exercise the causal path (DMA clamp, tile skipping, per-tile iota mask).
    out_c = jax.block_until_ready(
        self_attention(x, w_in, b_in, w_out, b_out, n_heads=H,
                       causal_mask=True))
    ref_c = _reference(x, w_in, b_in, w_out, b_out, H, causal_mask=True)
    assert jnp.allclose(out_c, ref_c, atol=5e-2, rtol=5e-2), "causal mismatch"

    print("KERNEL_OK")
</pallas_src>

<mosaic_0001>
module attributes {stable_mosaic.version = 11 : i64} {
  func.func @_linear3_kernel(%arg0: i32, %arg1: i32, %arg2: i32, %arg3: i32, %arg4: memref<16x32xbf16, #tpu.memory_space<vmem>>, %arg5: memref<1x32x32xbf16, #tpu.memory_space<vmem>>, %arg6: memref<1x1x32xf32, #tpu.memory_space<vmem>>, %arg7: memref<1x16x32xbf16, #tpu.memory_space<vmem>>, %arg8: memref<16x32xf32, #tpu.memory_space<vmem>>) attributes {dimension_semantics = [#tpu.dimension_semantics<parallel>, #tpu.dimension_semantics<parallel>, #tpu.dimension_semantics<parallel>, #tpu.dimension_semantics<arbitrary>], iteration_bounds = array<i64: 3, 1, 1, 1>, scalar_prefetch = 0 : i64, scratch_operands = 1 : i64, tpu.core_type = #tpu.core_type<tc>, window_params = [{transform_indices = @transform_0, window_bounds = array<i64: 16, 32>}, {transform_indices = @transform_1, window_bounds = array<i64: 1, 32, 32>}, {transform_indices = @transform_2, window_bounds = array<i64: 1, 1, 32>}, {transform_indices = @transform_3, window_bounds = array<i64: 1, 16, 32>}]} {
    %c0_i32 = arith.constant 0 : i32
    %0 = arith.cmpi eq, %arg3, %c0_i32 : i32
    %1 = arith.extui %0 : i1 to i32
    %c0_i32_0 = arith.constant 0 : i32
    %2 = arith.cmpi ne, %1, %c0_i32_0 : i32
    scf.if %2 {
      %cst_11 = arith.constant 0.000000e+00 : f32
      %13 = vector.broadcast %cst_11 : f32 to vector<16x32xf32>
      %c0_12 = arith.constant 0 : index
      %c0_13 = arith.constant 0 : index
      %14 = vector.load %arg8[%c0_12, %c0_13] : memref<16x32xf32, #tpu.memory_space<vmem>>, vector<16x32xf32>
      tpu.vector_store %arg8[%c0_12, %c0_13], %13 {strides = array<i32>} : memref<16x32xf32, #tpu.memory_space<vmem>>, vector<16x32xf32>,
    } else {
    }
    %c0 = arith.constant 0 : index
    %c0_1 = arith.constant 0 : index
    %3 = vector.load %arg8[%c0, %c0_1] : memref<16x32xf32, #tpu.memory_space<vmem>>, vector<16x32xf32>
    %c0_2 = arith.constant 0 : index
    %c0_3 = arith.constant 0 : index
    %4 = vector.load %arg4[%c0_2, %c0_3] : memref<16x32xbf16, #tpu.memory_space<vmem>>, vector<16x32xbf16>
    %c0_4 = arith.constant 0 : index
    %c0_5 = arith.constant 0 : index
    %c0_6 = arith.constant 0 : index
    %5 = vector.load %arg5[%c0_4, %c0_5, %c0_6] : memref<1x32x32xbf16, #tpu.memory_space<vmem>>, vector<1x32x32xbf16>
    %6 = vector.shape_cast %5 : vector<1x32x32xbf16> to vector<32x32xbf16>
    %cst = arith.constant dense<0.000000e+00> : vector<16x32xf32>
    %7 = tpu.matmul %4, %6, %cst {dimension_numbers = #tpu.dot_dimension_numbers<[1], [0], [0], [1], [0, 0, 1, 1], [], []>} : vector<16x32xbf16>, vector<32x32xbf16>, vector<16x32xf32> -> vector<16x32xf32>
    %8 = arith.addf %3, %7 : vector<16x32xf32>
    %c0_7 = arith.constant 0 : index
    %c0_8 = arith.constant 0 : index
    %9 = vector.load %arg8[%c0_7, %c0_8] : memref<16x32xf32, #tpu.memory_space<vmem>>, vector<16x32xf32>
    tpu.vector_store %arg8[%c0_7, %c0_8], %8 {strides = array<i32>} : memref<16x32xf32, #tpu.memory_space<vmem>>, vector<16x32xf32>,
    %c0_i32_9 = arith.constant 0 : i32
    %10 = arith.cmpi eq, %arg3, %c0_i32_9 : i32
    %11 = arith.extui %10 : i1 to i32
    %c0_i32_10 = arith.constant 0 : i32
    %12 = arith.cmpi ne, %11, %c0_i32_10 : i32
    scf.if %12 {
      %c0_11 = arith.constant 0 : index
      %c0_12 = arith.constant 0 : index
      %13 = vector.load %arg8[%c0_11, %c0_12] : memref<16x32xf32, #tpu.memory_space<vmem>>, vector<16x32xf32>
      %c0_13 = arith.constant 0 : index
      %c0_14 = arith.constant 0 : index
      %c0_15 = arith.constant 0 : index
      %14 = vector.load %arg6[%c0_13, %c0_14, %c0_15] : memref<1x1x32xf32, #tpu.memory_space<vmem>>, vector<1x1x32xf32>
      %15 = vector.shape_cast %14 : vector<1x1x32xf32> to vector<1x32xf32>
      %16 = vector.broadcast %15 : vector<1x32xf32> to vector<16x32xf32>
      %17 = arith.addf %13, %16 : vector<16x32xf32>
      %18 = arith.truncf %17 : vector<16x32xf32> to vector<16x32xbf16>
      %c0_16 = arith.constant 0 : index
      %c0_17 = arith.constant 0 : index
      %c0_18 = arith.constant 0 : index
      %19 = vector.load %arg7[%c0_16, %c0_17, %c0_18] : memref<1x16x32xbf16, #tpu.memory_space<vmem>>, vector<1x16x32xbf16>
      %20 = vector.shape_cast %19 : vector<1x16x32xbf16> to vector<16x32xbf16>
      %21 = vector.shape_cast %18 : vector<16x32xbf16> to vector<1x16x32xbf16>
      tpu.vector_store %arg7[%c0_16, %c0_17, %c0_18], %21 {strides = array<i32>} : memref<1x16x32xbf16, #tpu.memory_space<vmem>>, vector<1x16x32xbf16>,
    } else {
    }
    return
  }
  func.func @transform_0(%arg0: i32, %arg1: i32, %arg2: i32, %arg3: i32) -> (i32, i32) {
    %c0_i32 = arith.constant 0 : i32
    return %arg1, %arg3 : i32, i32
  }
  func.func @transform_1(%arg0: i32, %arg1: i32, %arg2: i32, %arg3: i32) -> (i32, i32, i32) {
    %c0_i32 = arith.constant 0 : i32
    return %arg0, %arg3, %arg2 : i32, i32, i32
  }
  func.func @transform_2(%arg0: i32, %arg1: i32, %arg2: i32, %arg3: i32) -> (i32, i32, i32) {
    %c0_i32 = arith.constant 0 : i32
    %c0_i32_0 = arith.constant 0 : i32
    return %arg0, %c0_i32, %arg2 : i32, i32, i32
  }
  func.func @transform_3(%arg0: i32, %arg1: i32, %arg2: i32, %arg3: i32) -> (i32, i32, i32) {
    %c0_i32 = arith.constant 0 : i32
    return %arg0, %arg1, %arg2 : i32, i32, i32
  }
}

module attributes {stable_mosaic.version = 11 : i64} {
  func.func @_linear3_kernel(%arg0: i32, %arg1: i32, %arg2: i32, %arg3: i32, %arg4: memref<16x32xbf16, #tpu.memory_space<vmem>>, %arg5: memref<1x32x32xbf16, #tpu.memory_space<vmem>>, %arg6: memref<1x1x32xf32, #tpu.memory_space<vmem>>, %arg7: memref<1x16x32xf32, #tpu.memory_space<vmem>>, %arg8: memref<16x32xf32, #tpu.memory_space<vmem>>) attributes {dimension_semantics = [#tpu.dimension_semantics<parallel>, #tpu.dimension_semantics<parallel>, #tpu.dimension_semantics<parallel>, #tpu.dimension_semantics<arbitrary>], iteration_bounds = array<i64: 1, 1, 1, 1>, scalar_prefetch = 0 : i64, scratch_operands = 1 : i64, tpu.core_type = #tpu.core_type<tc>, window_params = [{transform_indices = @transform_0, window_bounds = array<i64: 16, 32>}, {transform_indices = @transform_1, window_bounds = array<i64: 1, 32, 32>}, {transform_indices = @transform_2, window_bounds = array<i64: 1, 1, 32>}, {transform_indices = @transform_3, window_bounds = array<i64: 1, 16, 32>}]} {
    %c0_i32 = arith.constant 0 : i32
    %0 = arith.cmpi eq, %arg3, %c0_i32 : i32
    %1 = arith.extui %0 : i1 to i32
    %c0_i32_0 = arith.constant 0 : i32
    %2 = arith.cmpi ne, %1, %c0_i32_0 : i32
    scf.if %2 {
      %cst_11 = arith.constant 0.000000e+00 : f32
      %13 = vector.broadcast %cst_11 : f32 to vector<16x32xf32>
      %c0_12 = arith.constant 0 : index
      %c0_13 = arith.constant 0 : index
      %14 = vector.load %arg8[%c0_12, %c0_13] : memref<16x32xf32, #tpu.memory_space<vmem>>, vector<16x32xf32>
      tpu.vector_store %arg8[%c0_12, %c0_13], %13 {strides = array<i32>} : memref<16x32xf32, #tpu.memory_space<vmem>>, vector<16x32xf32>,
    } else {
    }
    %c0 = arith.constant 0 : index
    %c0_1 = arith.constant 0 : index
    %3 = vector.load %arg8[%c0, %c0_1] : memref<16x32xf32, #tpu.memory_space<vmem>>, vector<16x32xf32>
    %c0_2 = arith.constant 0 : index
    %c0_3 = arith.constant 0 : index
    %4 = vector.load %arg4[%c0_2, %c0_3] : memref<16x32xbf16, #tpu.memory_space<vmem>>, vector<16x32xbf16>
    %c0_4 = arith.constant 0 : index
    %c0_5 = arith.constant 0 : index
    %c0_6 = arith.constant 0 : index
    %5 = vector.load %arg5[%c0_4, %c0_5, %c0_6] : memref<1x32x32xbf16, #tpu.memory_space<vmem>>, vector<1x32x32xbf16>
    %6 = vector.shape_cast %5 : vector<1x32x32xbf16> to vector<32x32xbf16>
    %cst = arith.constant dense<0.000000e+00> : vector<16x32xf32>
    %7 = tpu.matmul %4, %6, %cst {dimension_numbers = #tpu.dot_dimension_numbers<[1], [0], [0], [1], [0, 0, 1, 1], [], []>} : vector<16x32xbf16>, vector<32x32xbf16>, vector<16x32xf32> -> vector<16x32xf32>
    %8 = arith.addf %3, %7 : vector<16x32xf32>
    %c0_7 = arith.constant 0 : index
    %c0_8 = arith.constant 0 : index
    %9 = vector.load %arg8[%c0_7, %c0_8] : memref<16x32xf32, #tpu.memory_space<vmem>>, vector<16x32xf32>
    tpu.vector_store %arg8[%c0_7, %c0_8], %8 {strides = array<i32>} : memref<16x32xf32, #tpu.memory_space<vmem>>, vector<16x32xf32>,
    %c0_i32_9 = arith.constant 0 : i32
    %10 = arith.cmpi eq, %arg3, %c0_i32_9 : i32
    %11 = arith.extui %10 : i1 to i32
    %c0_i32_10 = arith.constant 0 : i32
    %12 = arith.cmpi ne, %11, %c0_i32_10 : i32
    scf.if %12 {
      %c0_11 = arith.constant 0 : index
      %c0_12 = arith.constant 0 : index
      %13 = vector.load %arg8[%c0_11, %c0_12] : memref<16x32xf32, #tpu.memory_space<vmem>>, vector<16x32xf32>
      %c0_13 = arith.constant 0 : index
      %c0_14 = arith.constant 0 : index
      %c0_15 = arith.constant 0 : index
      %14 = vector.load %arg6[%c0_13, %c0_14, %c0_15] : memref<1x1x32xf32, #tpu.memory_space<vmem>>, vector<1x1x32xf32>
      %15 = vector.shape_cast %14 : vector<1x1x32xf32> to vector<1x32xf32>
      %16 = vector.broadcast %15 : vector<1x32xf32> to vector<16x32xf32>
      %17 = arith.addf %13, %16 : vector<16x32xf32>
      %c0_16 = arith.constant 0 : index
      %c0_17 = arith.constant 0 : index
      %c0_18 = arith.constant 0 : index
      %18 = vector.load %arg7[%c0_16, %c0_17, %c0_18] : memref<1x16x32xf32, #tpu.memory_space<vmem>>, vector<1x16x32xf32>
      %19 = vector.shape_cast %18 : vector<1x16x32xf32> to vector<16x32xf32>
      %20 = vector.shape_cast %17 : vector<16x32xf32> to vector<1x16x32xf32>
      tpu.vector_store %arg7[%c0_16, %c0_17, %c0_18], %20 {strides = array<i32>} : memref<1x16x32xf32, #tpu.memory_space<vmem>>, vector<1x16x32xf32>,
    } else {
    }
    return
  }
  func.func @transform_0(%arg0: i32, %arg1: i32, %arg2: i32, %arg3: i32) -> (i32, i32) {
    %c0_i32 = arith.constant 0 : i32
    return %arg1, %arg3 : i32, i32
  }
  func.func @transform_1(%arg0: i32, %arg1: i32, %arg2: i32, %arg3: i32) -> (i32, i32, i32) {
    %c0_i32 = arith.constant 0 : i32
    return %arg0, %arg3, %arg2 : i32, i32, i32
  }
  func.func @transform_2(%arg0: i32, %arg1: i32, %arg2: i32, %arg3: i32) -> (i32, i32, i32) {
    %c0_i32 = arith.constant 0 : i32
    %c0_i32_0 = arith.constant 0 : i32
    return %arg0, %c0_i32, %arg2 : i32, i32, i32
  }
  func.func @transform_3(%arg0: i32, %arg1: i32, %arg2: i32, %arg3: i32) -> (i32, i32, i32) {
    %c0_i32 = arith.constant 0 : i32
    return %arg0, %arg1, %arg2 : i32, i32, i32
  }
}

module attributes {stable_mosaic.version = 11 : i64} {
  func.func @_flash_kernel(%arg0: i32, %arg1: i32, %arg2: i32, %arg3: i32, %arg4: memref<1x1x8x32xbf16, #tpu.memory_space<vmem>>, %arg5: memref<1x1x8x32xbf16, #tpu.memory_space<vmem>>, %arg6: memref<1x1x8x32xbf16, #tpu.memory_space<vmem>>, %arg7: memref<1x8x32xbf16, #tpu.memory_space<vmem>>, %arg8: memref<8x32xbf16, #tpu.memory_space<vmem>>, %arg9: memref<8x4xf32, #tpu.memory_space<vmem>>, %arg10: memref<8x4xf32, #tpu.memory_space<vmem>>, %arg11: memref<8x32xf32, #tpu.memory_space<vmem>>) attributes {dimension_semantics = [#tpu.dimension_semantics<parallel>, #tpu.dimension_semantics<parallel>, #tpu.dimension_semantics<parallel>, #tpu.dimension_semantics<arbitrary>], iteration_bounds = array<i64: 2, 1, 1, 1>, scalar_prefetch = 0 : i64, scratch_operands = 4 : i64, tpu.core_type = #tpu.core_type<tc>, window_params = [{transform_indices = @transform_0, window_bounds = array<i64: 1, 1, 8, 32>}, {transform_indices = @transform_1, window_bounds = array<i64: 1, 1, 8, 32>}, {transform_indices = @transform_2, window_bounds = array<i64: 1, 1, 8, 32>}, {transform_indices = @transform_3, window_bounds = array<i64: 1, 8, 32>}]} {
    %c0_i32 = arith.constant 0 : i32
    %0 = arith.cmpi eq, %arg3, %c0_i32 : i32
    %1 = arith.extui %0 : i1 to i32
    %c0_i32_0 = arith.constant 0 : i32
    %2 = arith.cmpi ne, %1, %c0_i32_0 : i32
    scf.if %2 {
      %cst_77 = arith.constant 0xFF800000 : f32
      %135 = vector.broadcast %cst_77 : f32 to vector<8x4xf32>
      %c0_78 = arith.constant 0 : index
      %c0_79 = arith.constant 0 : index
      %136 = vector.load %arg9[%c0_78, %c0_79] : memref<8x4xf32, #tpu.memory_space<vmem>>, vector<8x4xf32>
      tpu.vector_store %arg9[%c0_78, %c0_79], %135 {strides = array<i32>} : memref<8x4xf32, #tpu.memory_space<vmem>>, vector<8x4xf32>,
      %cst_80 = arith.constant 0.000000e+00 : f32
      %137 = vector.broadcast %cst_80 : f32 to vector<8x4xf32>
      %c0_81 = arith.constant 0 : index
      %c0_82 = arith.constant 0 : index
      %138 = vector.load %arg10[%c0_81, %c0_82] : memref<8x4xf32, #tpu.memory_space<vmem>>, vector<8x4xf32>
      tpu.vector_store %arg10[%c0_81, %c0_82], %137 {strides = array<i32>} : memref<8x4xf32, #tpu.memory_space<vmem>>, vector<8x4xf32>,
      %cst_83 = arith.constant 0.000000e+00 : f32
      %139 = vector.broadcast %cst_83 : f32 to vector<8x32xf32>
      %c0_84 = arith.constant 0 : index
      %c0_85 = arith.constant 0 : index
      %140 = vector.load %arg11[%c0_84, %c0_85] : memref<8x32xf32, #tpu.memory_space<vmem>>, vector<8x32xf32>
      tpu.vector_store %arg11[%c0_84, %c0_85], %139 {strides = array<i32>} : memref<8x32xf32, #tpu.memory_space<vmem>>, vector<8x32xf32>,
      %c0_86 = arith.constant 0 : index
      %c0_87 = arith.constant 0 : index
      %c0_88 = arith.constant 0 : index
      %c0_89 = arith.constant 0 : index
      %141 = vector.load %arg4[%c0_86, %c0_87, %c0_88, %c0_89] : memref<1x1x8x32xbf16, #tpu.memory_space<vmem>>, vector<1x1x8x32xbf16>
      %142 = vector.shape_cast %141 : vector<1x1x8x32xbf16> to vector<8x32xbf16>
      %143 = arith.extf %142 : vector<8x32xbf16> to vector<8x32xf32>
      %cst_90 = arith.constant 0.353553385 : f32
      %144 = vector.broadcast %cst_90 : f32 to vector<8x32xf32>
      %145 = arith.mulf %143, %144 : vector<8x32xf32>
      %146 = arith.truncf %145 : vector<8x32xf32> to vector<8x32xbf16>
      %c0_91 = arith.constant 0 : index
      %c0_92 = arith.constant 0 : index
      %147 = vector.load %arg8[%c0_91, %c0_92] : memref<8x32xbf16, #tpu.memory_space<vmem>>, vector<8x32xbf16>
      tpu.vector_store %arg8[%c0_91, %c0_92], %146 {strides = array<i32>} : memref<8x32xbf16, #tpu.memory_space<vmem>>, vector<8x32xbf16>,
    } else {
    }
    %c0 = arith.constant 0 : index
    %c0_1 = arith.constant 0 : index
    %3 = vector.load %arg8[%c0, %c0_1] : memref<8x32xbf16, #tpu.memory_space<vmem>>, vector<8x32xbf16>
    %c0_2 = arith.constant 0 : index
    %c0_3 = arith.constant 0 : index
    %c0_4 = arith.constant 0 : index
    %c0_5 = arith.constant 0 : index
    %4 = vector.load %arg5[%c0_2, %c0_3, %c0_4, %c0_5] : memref<1x1x8x32xbf16, #tpu.memory_space<vmem>>, vector<1x1x8x32xbf16>
    %5 = vector.shape_cast %4 : vector<1x1x8x32xbf16> to vector<8x32xbf16>
    %c0_6 = arith.constant 0 : index
    %c0_7 = arith.constant 0 : index
    %c0_8 = arith.constant 0 : index
    %c0_9 = arith.constant 0 : index
    %6 = vector.load %arg6[%c0_6, %c0_7, %c0_8, %c0_9] : memref<1x1x8x32xbf16, #tpu.memory_space<vmem>>, vector<1x1x8x32xbf16>
    %7 = vector.shape_cast %6 : vector<1x1x8x32xbf16> to vector<8x32xbf16>
    %8 = vector.extract_strided_slice %3 {offsets = [0, 0], sizes = [8, 8], strides = [1, 1]} : vector<8x32xbf16> to vector<8x8xbf16>
    %9 = vector.extract_strided_slice %5 {offsets = [0, 0], sizes = [8, 8], strides = [1, 1]} : vector<8x32xbf16> to vector<8x8xbf16>
    %cst = arith.constant dense<0.000000e+00> : vector<8x8xf32>
    %10 = tpu.matmul %8, %9, %cst {dimension_numbers = #tpu.dot_dimension_numbers<[1], [1], [0], [0], [0, 0, 1, 0], [], []>} : vector<8x8xbf16>, vector<8x8xbf16>, vector<8x8xf32> -> vector<8x8xf32>
    %c0_10 = arith.constant 0 : index
    %c0_11 = arith.constant 0 : index
    %11 = vector.load %arg9[%c0_10, %c0_11] : memref<8x4xf32, #tpu.memory_space<vmem>>, vector<8x1xf32>
    %cst_12 = arith.constant dense<0xFF800000> : vector<8xf32>
    %12 = vector.multi_reduction <maximumf>, %10, %cst_12 [1] : vector<8x8xf32> to vector<8xf32>
    %13 = vector.shape_cast %12 : vector<8xf32> to vector<8x1xf32>
    %14 = arith.maximumf %11, %13 : vector<8x1xf32>
    %cst_13 = arith.constant 0xFF800000 : f32
    %15 = vector.broadcast %cst_13 : f32 to vector<8x1xf32>
    %16 = arith.cmpf oeq, %14, %15 : vector<8x1xf32>
    %cst_14 = arith.constant 0.000000e+00 : f32
    %17 = vector.broadcast %cst_14 : f32 to vector<8x1xf32>
    %18 = arith.select %16, %17, %14 : vector<8x1xi1>, vector<8x1xf32>
    %19 = arith.subf %11, %18 : vector<8x1xf32>
    %20 = math.exp %19 : vector<8x1xf32>
    %21 = vector.broadcast %18 : vector<8x1xf32> to vector<8x8xf32>
    %22 = arith.subf %10, %21 : vector<8x8xf32>
    %23 = math.exp %22 : vector<8x8xf32>
    %c0_15 = arith.constant 0 : index
    %c0_16 = arith.constant 0 : index
    %24 = vector.load %arg10[%c0_15, %c0_16] : memref<8x4xf32, #tpu.memory_space<vmem>>, vector<8x1xf32>
    %25 = arith.mulf %20, %24 : vector<8x1xf32>
    %cst_17 = arith.constant dense<0.000000e+00> : vector<8xf32>
    %26 = vector.multi_reduction <add>, %23, %cst_17 [1] : vector<8x8xf32> to vector<8xf32>
    %27 = vector.shape_cast %26 : vector<8xf32> to vector<8x1xf32>
    %28 = arith.addf %25, %27 : vector<8x1xf32>
    %c0_18 = arith.constant 0 : index
    %c0_19 = arith.constant 0 : index
    %29 = vector.load %arg10[%c0_18, %c0_19] : memref<8x4xf32, #tpu.memory_space<vmem>>, vector<8x1xf32>
    tpu.vector_store %arg10[%c0_18, %c0_19], %28 {strides = array<i32>} : memref<8x4xf32, #tpu.memory_space<vmem>>, vector<8x1xf32>,
    %c0_20 = arith.constant 0 : index
    %c0_21 = arith.constant 0 : index
    %30 = vector.load %arg11[%c0_20, %c0_21] : memref<8x32xf32, #tpu.memory_space<vmem>>, vector<8x8xf32>
    %31 = vector.broadcast %20 : vector<8x1xf32> to vector<8x8xf32>
    %32 = arith.mulf %31, %30 : vector<8x8xf32>
    %33 = arith.truncf %23 : vector<8x8xf32> to vector<8x8xbf16>
    %34 = vector.extract_strided_slice %7 {offsets = [0, 0], sizes = [8, 8], strides = [1, 1]} : vector<8x32xbf16> to vector<8x8xbf16>
    %cst_22 = arith.constant dense<0.000000e+00> : vector<8x8xf32>
    %35 = tpu.matmul %33, %34, %cst_22 {dimension_numbers = #tpu.dot_dimension_numbers<[1], [0], [0], [1], [0, 0, 1, 1], [], []>} : vector<8x8xbf16>, vector<8x8xbf16>, vector<8x8xf32> -> vector<8x8xf32>
    %36 = arith.addf %32, %35 : vector<8x8xf32>
    %c0_23 = arith.constant 0 : index
    %c0_24 = arith.constant 0 : index
    %37 = vector.load %arg11[%c0_23, %c0_24] : memref<8x32xf32, #tpu.memory_space<vmem>>, vector<8x8xf32>
    tpu.vector_store %arg11[%c0_23, %c0_24], %36 {strides = array<i32>} : memref<8x32xf32, #tpu.memory_space<vmem>>, vector<8x8xf32>,
    %c0_25 = arith.constant 0 : index
    %c0_26 = arith.constant 0 : index
    %38 = vector.load %arg9[%c0_25, %c0_26] : memref<8x4xf32, #tpu.memory_space<vmem>>, vector<8x1xf32>
    tpu.vector_store %arg9[%c0_25, %c0_26], %14 {strides = array<i32>} : memref<8x4xf32, #tpu.memory_space<vmem>>, vector<8x1xf32>,
    %39 = vector.extract_strided_slice %3 {offsets = [0, 8], sizes = [8, 8], strides = [1, 1]} : vector<8x32xbf16> to vector<8x8xbf16>
    %40 = vector.extract_strided_slice %5 {offsets = [0, 8], sizes = [8, 8], strides = [1, 1]} : vector<8x32xbf16> to vector<8x8xbf16>
    %cst_27 = arith.constant dense<0.000000e+00> : vector<8x8xf32>
    %41 = tpu.matmul %39, %40, %cst_27 {dimension_numbers = #tpu.dot_dimension_numbers<[1], [1], [0], [0], [0, 0, 1, 0], [], []>} : vector<8x8xbf16>, vector<8x8xbf16>, vector<8x8xf32> -> vector<8x8xf32>
    %c0_28 = arith.constant 0 : index
    %c1 = arith.constant 1 : index
    %42 = vector.load %arg9[%c0_28, %c1] : memref<8x4xf32, #tpu.memory_space<vmem>>, vector<8x1xf32>
    %cst_29 = arith.constant dense<0xFF800000> : vector<8xf32>
    %43 = vector.multi_reduction <maximumf>, %41, %cst_29 [1] : vector<8x8xf32> to vector<8xf32>
    %44 = vector.shape_cast %43 : vector<8xf32> to vector<8x1xf32>
    %45 = arith.maximumf %42, %44 : vector<8x1xf32>
    %cst_30 = arith.constant 0xFF800000 : f32
    %46 = vector.broadcast %cst_30 : f32 to vector<8x1xf32>
    %47 = arith.cmpf oeq, %45, %46 : vector<8x1xf32>
    %cst_31 = arith.constant 0.000000e+00 : f32
    %48 = vector.broadcast %cst_31 : f32 to vector<8x1xf32>
    %49 = arith.select %47, %48, %45 : vector<8x1xi1>, vector<8x1xf32>
    %50 = arith.subf %42, %49 : vector<8x1xf32>
    %51 = math.exp %50 : vector<8x1xf32>
    %52 = vector.broadcast %49 : vector<8x1xf32> to vector<8x8xf32>
    %53 = arith.subf %41, %52 : vector<8x8xf32>
    %54 = math.exp %53 : vector<8x8xf32>
    %c0_32 = arith.constant 0 : index
    %c1_33 = arith.constant 1 : index
    %55 = vector.load %arg10[%c0_32, %c1_33] : memref<8x4xf32, #tpu.memory_space<vmem>>, vector<8x1xf32>
    %56 = arith.mulf %51, %55 : vector<8x1xf32>
    %cst_34 = arith.constant dense<0.000000e+00> : vector<8xf32>
    %57 = vector.multi_reduction <add>, %54, %cst_34 [1] : vector<8x8xf32> to vector<8xf32>
    %58 = vector.shape_cast %57 : vector<8xf32> to vector<8x1xf32>
    %59 = arith.addf %56, %58 : vector<8x1xf32>
    %c0_35 = arith.constant 0 : index
    %c1_36 = arith.constant 1 : index
    %60 = vector.load %arg10[%c0_35, %c1_36] : memref<8x4xf32, #tpu.memory_space<vmem>>, vector<8x1xf32>
    tpu.vector_store %arg10[%c0_35, %c1_36], %59 {strides = array<i32>} : memref<8x4xf32, #tpu.memory_space<vmem>>, vector<8x1xf32>,
    %c0_37 = arith.constant 0 : index
    %c8 = arith.constant 8 : index
    %61 = vector.load %arg11[%c0_37, %c8] : memref<8x32xf32, #tpu.memory_space<vmem>>, vector<8x8xf32>
    %62 = vector.broadcast %51 : vector<8x1xf32> to vector<8x8xf32>
    %63 = arith.mulf %62, %61 : vector<8x8xf32>
    %64 = arith.truncf %54 : vector<8x8xf32> to vector<8x8xbf16>
    %65 = vector.extract_strided_slice %7 {offsets = [0, 8], sizes = [8, 8], strides = [1, 1]} : vector<8x32xbf16> to vector<8x8xbf16>
    %cst_38 = arith.constant dense<0.000000e+00> : vector<8x8xf32>
    %66 = tpu.matmul %64, %65, %cst_38 {dimension_numbers = #tpu.dot_dimension_numbers<[1], [0], [0], [1], [0, 0, 1, 1], [], []>} : vector<8x8xbf16>, vector<8x8xbf16>, vector<8x8xf32> -> vector<8x8xf32>
    %67 = arith.addf %63, %66 : vector<8x8xf32>
    %c0_39 = arith.constant 0 : index
    %c8_40 = arith.constant 8 : index
    %68 = vector.load %arg11[%c0_39, %c8_40] : memref<8x32xf32, #tpu.memory_space<vmem>>, vector<8x8xf32>
    tpu.vector_store %arg11[%c0_39, %c8_40], %67 {strides = array<i32>} : memref<8x32xf32, #tpu.memory_space<vmem>>, vector<8x8xf32>,
    %c0_41 = arith.constant 0 : index
    %c1_42 = arith.constant 1 : index
    %69 = vector.load %arg9[%c0_41, %c1_42] : memref<8x4xf32, #tpu.memory_space<vmem>>, vector<8x1xf32>
    tpu.vector_store %arg9[%c0_41, %c1_42], %45 {strides = array<i32>} : memref<8x4xf32, #tpu.memory_space<vmem>>, vector<8x1xf32>,
    %70 = vector.extract_strided_slice %3 {offsets = [0, 16], sizes = [8, 8], strides = [1, 1]} : vector<8x32xbf16> to vector<8x8xbf16>
    %71 = vector.extract_strided_slice %5 {offsets = [0, 16], sizes = [8, 8], strides = [1, 1]} : vector<8x32xbf16> to vector<8x8xbf16>
    %cst_43 = arith.constant dense<0.000000e+00> : vector<8x8xf32>
    %72 = tpu.matmul %70, %71, %cst_43 {dimension_numbers = #tpu.dot_dimension_numbers<[1], [1], [0], [0], [0, 0, 1, 0], [], []>} : vector<8x8xbf16>, vector<8x8xbf16>, vector<8x8xf32> -> vector<8x8xf32>
    %c0_44 = arith.constant 0 : index
    %c2 = arith.constant 2 : index
    %73 = vector.load %arg9[%c0_44, %c2] : memref<8x4xf32, #tpu.memory_space<vmem>>, vector<8x1xf32>
    %cst_45 = arith.constant dense<0xFF800000> : vector<8xf32>
    %74 = vector.multi_reduction <maximumf>, %72, %cst_45 [1] : vector<8x8xf32> to vector<8xf32>
    %75 = vector.shape_cast %74 : vector<8xf32> to vector<8x1xf32>
    %76 = arith.maximumf %73, %75 : vector<8x1xf32>
    %cst_46 = arith.constant 0xFF800000 : f32
    %77 = vector.broadcast %cst_46 : f32 to vector<8x1xf32>
    %78 = arith.cmpf oeq, %76, %77 : vector<8x1xf32>
    %cst_47 = arith.constant 0.000000e+00 : f32
    %79 = vector.broadcast %cst_47 : f32 to vector<8x1xf32>
    %80 = arith.select %78, %79, %76 : vector<8x1xi1>, vector<8x1xf32>
    %81 = arith.subf %73, %80 : vector<8x1xf32>
    %82 = math.exp %81 : vector<8x1xf32>
    %83 = vector.broadcast %80 : vector<8x1xf32> to vector<8x8xf32>
    %84 = arith.subf %72, %83 : vector<8x8xf32>
    %85 = math.exp %84 : vector<8x8xf32>
    %c0_48 = arith.constant 0 : index
    %c2_49 = arith.constant 2 : index
    %86 = vector.load %arg10[%c0_48, %c2_49] : memref<8x4xf32, #tpu.memory_space<vmem>>, vector<8x1xf32>
    %87 = arith.mulf %82, %86 : vector<8x1xf32>
    %cst_50 = arith.constant dense<0.000000e+00> : vector<8xf32>
    %88 = vector.multi_reduction <add>, %85, %cst_50 [1] : vector<8x8xf32> to vector<8xf32>
    %89 = vector.shape_cast %88 : vector<8xf32> to vector<8x1xf32>
    %90 = arith.addf %87, %89 : vector<8x1xf32>
    %c0_51 = arith.constant 0 : index
    %c2_52 = arith.constant 2 : index
    %91 = vector.load %arg10[%c0_51, %c2_52] : memref<8x4xf32, #tpu.memory_space<vmem>>, vector<8x1xf32>
    tpu.vector_store %arg10[%c0_51, %c2_52], %90 {strides = array<i32>} : memref<8x4xf32, #tpu.memory_space<vmem>>, vector<8x1xf32>,
    %c0_53 = arith.constant 0 : index
    %c16 = arith.constant 16 : index
    %92 = vector.load %arg11[%c0_53, %c16] : memref<8x32xf32, #tpu.memory_space<vmem>>, vector<8x8xf32>
    %93 = vector.broadcast %82 : vector<8x1xf32> to vector<8x8xf32>
    %94 = arith.mulf %93, %92 : vector<8x8xf32>
    %95 = arith.truncf %85 : vector<8x8xf32> to vector<8x8xbf16>
    %96 = vector.extract_strided_slice %7 {offsets = [0, 16], sizes = [8, 8], strides = [1, 1]} : vector<8x32xbf16> to vector<8x8xbf16>
    %cst_54 = arith.constant dense<0.000000e+00> : vector<8x8xf32>
    %97 = tpu.matmul %95, %96, %cst_54 {dimension_numbers = #tpu.dot_dimension_numbers<[1], [0], [0], [1], [0, 0, 1, 1], [], []>} : vector<8x8xbf16>, vector<8x8xbf16>, vector<8x8xf32> -> vector<8x8xf32>
    %98 = arith.addf %94, %97 : vector<8x8xf32>
    %c0_55 = arith.constant 0 : index
    %c16_56 = arith.constant 16 : index
    %99 = vector.load %arg11[%c0_55, %c16_56] : memref<8x32xf32, #tpu.memory_space<vmem>>, vector<8x8xf32>
    tpu.vector_store %arg11[%c0_55, %c16_56], %98 {strides = array<i32>} : memref<8x32xf32, #tpu.memory_space<vmem>>, vector<8x8xf32>,
    %c0_57 = arith.constant 0 : index
    %c2_58 = arith.constant 2 : index
    %100 = vector.load %arg9[%c0_57, %c2_58] : memref<8x4xf32, #tpu.memory_space<vmem>>, vector<8x1xf32>
    tpu.vector_store %arg9[%c0_57, %c2_58], %76 {strides = array<i32>} : memref<8x4xf32, #tpu.memory_space<vmem>>, vector<8x1xf32>,
    %101 = vector.extract_strided_slice %3 {offsets = [0, 24], sizes = [8, 8], strides = [1, 1]} : vector<8x32xbf16> to vector<8x8xbf16>
    %102 = vector.extract_strided_slice %5 {offsets = [0, 24], sizes = [8, 8], strides = [1, 1]} : vector<8x32xbf16> to vector<8x8xbf16>
    %cst_59 = arith.constant dense<0.000000e+00> : vector<8x8xf32>
    %103 = tpu.matmul %101, %102, %cst_59 {dimension_numbers = #tpu.dot_dimension_numbers<[1], [1], [0], [0], [0, 0, 1, 0], [], []>} : vector<8x8xbf16>, vector<8x8xbf16>, vector<8x8xf32> -> vector<8x8xf32>
    %c0_60 = arith.constant 0 : index
    %c3 = arith.constant 3 : index
    %104 = vector.load %arg9[%c0_60, %c3] : memref<8x4xf32, #tpu.memory_space<vmem>>, vector<8x1xf32>
    %cst_61 = arith.constant dense<0xFF800000> : vector<8xf32>
    %105 = vector.multi_reduction <maximumf>, %103, %cst_61 [1] : vector<8x8xf32> to vector<8xf32>
    %106 = vector.shape_cast %105 : vector<8xf32> to vector<8x1xf32>
    %107 = arith.maximumf %104, %106 : vector<8x1xf32>
    %cst_62 = arith.constant 0xFF800000 : f32
    %108 = vector.broadcast %cst_62 : f32 to vector<8x1xf32>
    %109 = arith.cmpf oeq, %107, %108 : vector<8x1xf32>
    %cst_63 = arith.constant 0.000000e+00 : f32
    %110 = vector.broadcast %cst_63 : f32 to vector<8x1xf32>
    %111 = arith.select %109, %110, %107 : vector<8x1xi1>, vector<8x1xf32>
    %112 = arith.subf %104, %111 : vector<8x1xf32>
    %113 = math.exp %112 : vector<8x1xf32>
    %114 = vector.broadcast %111 : vector<8x1xf32> to vector<8x8xf32>
    %115 = arith.subf %103, %114 : vector<8x8xf32>
    %116 = math.exp %115 : vector<8x8xf32>
    %c0_64 = arith.constant 0 : index
    %c3_65 = arith.constant 3 : index
    %117 = vector.load %arg10[%c0_64, %c3_65] : memref<8x4xf32, #tpu.memory_space<vmem>>, vector<8x1xf32>
    %118 = arith.mulf %113, %117 : vector<8x1xf32>
    %cst_66 = arith.constant dense<0.000000e+00> : vector<8xf32>
    %119 = vector.multi_reduction <add>, %116, %cst_66 [1] : vector<8x8xf32> to vector<8xf32>
    %120 = vector.shape_cast %119 : vector<8xf32> to vector<8x1xf32>
    %121 = arith.addf %118, %120 : vector<8x1xf32>
    %c0_67 = arith.constant 0 : index
    %c3_68 = arith.constant 3 : index
    %122 = vector.load %arg10[%c0_67, %c3_68] : memref<8x4xf32, #tpu.memory_space<vmem>>, vector<8x1xf32>
    tpu.vector_store %arg10[%c0_67, %c3_68], %121 {strides = array<i32>} : memref<8x4xf32, #tpu.memory_space<vmem>>, vector<8x1xf32>,
    %c0_69 = arith.constant 0 : index
    %c24 = arith.constant 24 : index
    %123 = vector.load %arg11[%c0_69, %c24] : memref<8x32xf32, #tpu.memory_space<vmem>>, vector<8x8xf32>
    %124 = vector.broadcast %113 : vector<8x1xf32> to vector<8x8xf32>
    %125 = arith.mulf %124, %123 : vector<8x8xf32>
    %126 = arith.truncf %116 : vector<8x8xf32> to vector<8x8xbf16>
    %127 = vector.extract_strided_slice %7 {offsets = [0, 24], sizes = [8, 8], strides = [1, 1]} : vector<8x32xbf16> to vector<8x8xbf16>
    %cst_70 = arith.constant dense<0.000000e+00> : vector<8x8xf32>
    %128 = tpu.matmul %126, %127, %cst_70 {dimension_numbers = #tpu.dot_dimension_numbers<[1], [0], [0], [1], [0, 0, 1, 1], [], []>} : vector<8x8xbf16>, vector<8x8xbf16>, vector<8x8xf32> -> vector<8x8xf32>
    %129 = arith.addf %125, %128 : vector<8x8xf32>
    %c0_71 = arith.constant 0 : index
    %c24_72 = arith.constant 24 : index
    %130 = vector.load %arg11[%c0_71, %c24_72] : memref<8x32xf32, #tpu.memory_space<vmem>>, vector<8x8xf32>
    tpu.vector_store %arg11[%c0_71, %c24_72], %129 {strides = array<i32>} : memref<8x32xf32, #tpu.memory_space<vmem>>, vector<8x8xf32>,
    %c0_73 = arith.constant 0 : index
    %c3_74 = arith.constant 3 : index
    %131 = vector.load %arg9[%c0_73, %c3_74] : memref<8x4xf32, #tpu.memory_space<vmem>>, vector<8x1xf32>
    tpu.vector_store %arg9[%c0_73, %c3_74], %107 {strides = array<i32>} : memref<8x4xf32, #tpu.memory_space<vmem>>, vector<8x1xf32>,
    %c0_i32_75 = arith.constant 0 : i32
    %132 = arith.cmpi eq, %arg3, %c0_i32_75 : i32
    %133 = arith.extui %132 : i1 to i32
    %c0_i32_76 = arith.constant 0 : i32
    %134 = arith.cmpi ne, %133, %c0_i32_76 : i32
    scf.if %134 {
      %c0_77 = arith.constant 0 : index
      %c0_78 = arith.constant 0 : index
      %135 = vector.load %arg11[%c0_77, %c0_78] : memref<8x32xf32, #tpu.memory_space<vmem>>, vector<8x32xf32>
      %c0_79 = arith.constant 0 : index
      %c0_80 = arith.constant 0 : index
      %136 = vector.load %arg10[%c0_79, %c0_80] : memref<8x4xf32, #tpu.memory_space<vmem>>, vector<8x4xf32>
      %137 = tpu.reciprocal %136 {approx = true} : vector<8x4xf32> -> vector<8x4xf32>
      %138 = vector.extract_strided_slice %135 {offsets = [0, 0], sizes = [8, 8], strides = [1, 1]} : vector<8x32xf32> to vector<8x8xf32>
      %139 = vector.extract_strided_slice %137 {offsets = [0, 0], sizes = [8, 1], strides = [1, 1]} : vector<8x4xf32> to vector<8x1xf32>
      %140 = vector.broadcast %139 : vector<8x1xf32> to vector<8x8xf32>
      %141 = arith.mulf %138, %140 : vector<8x8xf32>
      %142 = vector.extract_strided_slice %135 {offsets = [0, 8], sizes = [8, 8], strides = [1, 1]} : vector<8x32xf32> to vector<8x8xf32>
      %143 = vector.extract_strided_slice %137 {offsets = [0, 1], sizes = [8, 1], strides = [1, 1]} : vector<8x4xf32> to vector<8x1xf32>
      %144 = vector.broadcast %143 : vector<8x1xf32> to vector<8x8xf32>
      %145 = arith.mulf %142, %144 : vector<8x8xf32>
      %146 = vector.extract_strided_slice %135 {offsets = [0, 16], sizes = [8, 8], strides = [1, 1]} : vector<8x32xf32> to vector<8x8xf32>
      %147 = vector.extract_strided_slice %137 {offsets = [0, 2], sizes = [8, 1], strides = [1, 1]} : vector<8x4xf32> to vector<8x1xf32>
      %148 = vector.broadcast %147 : vector<8x1xf32> to vector<8x8xf32>
      %149 = arith.mulf %146, %148 : vector<8x8xf32>
      %150 = vector.extract_strided_slice %135 {offsets = [0, 24], sizes = [8, 8], strides = [1, 1]} : vector<8x32xf32> to vector<8x8xf32>
      %151 = vector.extract_strided_slice %137 {offsets = [0, 3], sizes = [8, 1], strides = [1, 1]} : vector<8x4xf32> to vector<8x1xf32>
      %152 = vector.broadcast %151 : vector<8x1xf32> to vector<8x8xf32>
      %153 = arith.mulf %150, %152 : vector<8x8xf32>
      %154 = tpu.concatenate %141, %145, %149, %153 in 1 : vector<8x8xf32>, vector<8x8xf32>, vector<8x8xf32>, vector<8x8xf32> -> vector<8x32xf32>
      %155 = arith.truncf %154 : vector<8x32xf32> to vector<8x32xbf16>
      %c0_81 = arith.constant 0 : index
      %c0_82 = arith.constant 0 : index
      %c0_83 = arith.constant 0 : index
      %156 = vector.load %arg7[%c0_81, %c0_82, %c0_83] : memref<1x8x32xbf16, #tpu.memory_space<vmem>>, vector<1x8x32xbf16>
      %157 = vector.shape_cast %156 : vector<1x8x32xbf16> to vector<8x32xbf16>
      %158 = vector.shape_cast %155 : vector<8x32xbf16> to vector<1x8x32xbf16>
      tpu.vector_store %arg7[%c0_81, %c0_82, %c0_83], %158 {strides = array<i32>} : memref<1x8x32xbf16, #tpu.memory_space<vmem>>, vector<1x8x32xbf16>,
    } else {
    }
    return
  }
  func.func @transform_0(%arg0: i32, %arg1: i32, %arg2: i32, %arg3: i32) -> (i32, i32, i32, i32) {
    %c0_i32 = arith.constant 0 : i32
    %c0_i32_0 = arith.constant 0 : i32
    return %c0_i32, %arg0, %arg2, %arg1 : i32, i32, i32, i32
  }
  func.func @transform_1(%arg0: i32, %arg1: i32, %arg2: i32, %arg3: i32) -> (i32, i32, i32, i32) {
    %c1_i32 = arith.constant 1 : i32
    %c0_i32 = arith.constant 0 : i32
    return %c1_i32, %arg0, %arg3, %arg1 : i32, i32, i32, i32
  }
  func.func @transform_2(%arg0: i32, %arg1: i32, %arg2: i32, %arg3: i32) -> (i32, i32, i32, i32) {
    %c2_i32 = arith.constant 2 : i32
    %c0_i32 = arith.constant 0 : i32
    return %c2_i32, %arg0, %arg3, %arg1 : i32, i32, i32, i32
  }
  func.func @transform_3(%arg0: i32, %arg1: i32, %arg2: i32, %arg3: i32) -> (i32, i32, i32) {
    %c0_i32 = arith.constant 0 : i32
    return %arg0, %arg2, %arg1 : i32, i32, i32
  }
}

</mosaic_0001>

<bundles_post_ra>
// kernel: self_attention.3
= control target key start
LH: loop header
LB: loop body
LE: loop exit
PB: predicated region body
PF: predicated region fallthrough
CT: control target
= control target key end

     0   :  { %s653_s12 = smov 0   ;;  %s655_s13 = smov 0   ;;  %s697_s0 = inlined_call_operand.vmem [shape: bf16[16,32], index: 0, kind: input, shape index: {}]   ;;  %s698_s1 = inlined_call_operand.vmem [shape: bf16[3,32,32], index: 1, kind: input, shape index: {}]   ;;  %s699_s2 = inlined_call_operand.vmem [shape: f32[3,1,32], index: 2, kind: input, shape index: {}]   ;;  %s700_s3 = inlined_call_operand.vmem [shape: bf16[3,16,32], index: 3, kind: output, shape index: {}]  }
   0x1   :  { %s657_s14 = smov 0  }
   0x2 LB: > { %s39_s15 = sadd.s32 1, %s625_s13  ;;  %p549_p0 = scmp.ge.s32.totalorder %s629_s14, 1  ;;  %s629_s14 = sphi %s657_s14, %s13_s14   ;;  %s625_s13 = sphi %s655_s13, %s702_s13   ;;  %s621_s12 = sphi %s653_s12, %s701_s12  }
   0x3   : > { %p41_p1 = scmp.ge.s32.totalorder %s39_s15, 3  ;;  %p208_p2 = scmp.lt.s32.totalorder %s629_s14, 4 }
   0x5   : > { %s704_s15 = smov (%p41_p1, %s39_s15), 0  ;;  %p209_p3 = pnand %p549_p0, %p208_p2 }
   0x6   : > { %p270_p4 = scmp.lt.s32.totalorder (!%p209_p3), %s621_s12, 2  ;;  %vm306_vm0 = vcmask (!%p209_p3), 261120   ;;  %v631_v0 = vmov (!%p209_p3), 0.0   ;;  %vm632_vm1 = vmmov (!%p209_p3), 0   ;;  %v606_v3 = vld [vmem:[%s697_s0] sm:$0xff] (!%p209_p3)   ;;  %vm405_vm2 = vcmask (!%p209_p3), 257024  }
   0x7   : > { %212 = sbr.rel (%p209_p3) target bundleno = 254 (0xfe), region = 32  ;;  %570 = vmatprep.subr.bf16.mxu0 (!%p209_p3), %v631_v0  ;;  %574 = vmatprep.mubr.msk.bf16.mxu0 (!%p209_p3), %vm632_vm1, %v631_v0  ;;  %307 = vst.msk [vmem:[#allocation2] sm:$0xff] (!%p209_p3), %vm306_vm0, %v631_v0  ;;  %308 = vst.msk [vmem:[#allocation2 + $0x8] sm:$0xff] (!%p209_p3), %vm306_vm0, %v631_v0 }
   0xe   : > { %s706_s12 = smov (!%p270_p4, %s621_s12), 2  ;;  %v309_v4 = vld [vmem:[#allocation2] sm:$0xff]  ;;  %v310_v6 = vld [vmem:[#allocation2 + $0x8] sm:$0xff] }
   0xf   : > { %s563_s16 = sshll.u32 %s706_s12, 4  ;;  %s287_s24 = scalar_lea.vmem %s699_s2, %s706_s12 }
  0x10   : > { %s280_s19 = scalar_lea.vmem %s698_s1, %s563_s16  ;;  %v558_v12 = vld [vmem:[%s287_s24] ss:$0 sm:$0xff]  ;;  %s564_s25 = sshll.u32 %s706_s12, 3 }
  0x11   : > { %v604_v1 = vld [vmem:[%s280_s19] sm:$0xff]   ;;  %v605_v2 = vld [vmem:[%s280_s19 + $0x8] sm:$0xff]   ;;  %s299_s28 = scalar_lea.vmem %s700_s3, %s564_s25 }
  0x12   : > { %571 = vmatpush3.bf16.msra.mxu0 %v604_v1 }
  0x13   : > { %572 = vmatprep.subr.bf16.mxu0 %v631_v0 }
  0x16   : > { %573 = vmatpush3.bf16.msra.mxu0 %v605_v2 }
  0x19   : > { %575 = vmatmul.mubr.msk.bf16.vlgmr.msra.gmra.mrb[0].mxu0 %vm306_vm0, %v606_v3 }
  0xec   : > { %v372_v5 = vpop.f32.mrb[0].mxu0 }
  0xed   : > { %v379_v7 = vadd.f32 %v372_v5, %v309_v4  ;;  %v576_v8 = vpop.f32.mrb[1].mxu0 }
  0xee   : > { %v375_v9 = vpop.f32.mrb[2].mxu0 }
  0xef   : > { %381 = vst.msk [vmem:[#allocation2] sm:$0xff] %vm306_vm0, %v379_v7  ;;  %v380_v10 = vadd.f32 %v375_v9, %v310_v6  ;;  %v577_v11 = vpop.f32.mrb[3].mxu0 }
  0xf1   : > { %382 = vst.msk [vmem:[#allocation2 + $0x8] sm:$0xff] %vm306_vm0, %v380_v10 }
  0xf6   : > { %v386_v13 = vld [vmem:[#allocation2] sm:$0xff] }
  0xf7   : > { %v395_v14 = vadd.f32 %v558_v12, %v386_v13 }
  0xf8   : > { %v387_v15 = vld [vmem:[#allocation2 + $0x8] sm:$0xff] }
  0xf9   : > { %v565_v16 = vpack.c.bf16 %v395_v14, %v395_v14  ;;  %v396_v17 = vadd.f32 %v558_v12, %v387_v15 }
  0xfb   : > { %406 = vst.msk [vmem:[%s299_s28] sm:$0xf] %vm405_vm2, %v565_v16  ;;  %v566_v18 = vpack.c.bf16 %v396_v17, %v396_v17 }
  0xfd   : > { %407 = vst.msk [vmem:[%s299_s28 + $0x4] sm:$0xf] %vm405_vm2, %v566_v18 }
  0xfe PF: > { %s13_s14 = sadd.s32 1, %s629_s14   ;;  %s701_s12 = smov %s625_s13 }
  0xff   : > { %p10_p5 = scmp.ge.s32.totalorder %s13_s14, 5   ;;  %s702_s13 = smov %s704_s15 }
 0x101   :  { %12 = sbr.rel (!%p10_p5) target bundleno = 2 (0x2), region = 76 }

// kernel: self_attention.5
= control target key start
LH: loop header
LB: loop body
LE: loop exit
PB: predicated region body
PF: predicated region fallthrough
CT: control target
= control target key end

     0   :  { %v177_v1 = vmov 0.0   ;;  %vm178_vm0 = vmmov 0   ;;  %vm20_vm1 = vcmask 261120   ;;  %s233_s0 = inlined_call_operand.vmem [shape: bf16[16,32], index: 0, kind: input, shape index: {}]   ;;  %s234_s1 = inlined_call_operand.vmem [shape: bf16[1,32,32], index: 1, kind: input, shape index: {}]   ;;  %s235_s2 = inlined_call_operand.vmem [shape: f32[1,1,32], index: 2, kind: input, shape index: {}]   ;;  %s236_s3 = inlined_call_operand.hbm [shape: f32[1,16,32], index: 3, kind: output, shape index: {}]  }
   0x1   :  { %v150_v0 = vld [vmem:[%s234_s1] sm:$0xff]   ;;  %137 = vmatprep.subr.bf16.mxu0 %v177_v1  ;;  %v151_v2 = vld [vmem:[%s234_s1 + $0x8] sm:$0xff]   ;;  %141 = vmatprep.mubr.msk.bf16.mxu0 %vm178_vm0, %v177_v1  ;;  %21 = vst.msk [vmem:[#allocation2] sm:$0xff] %vm20_vm1, %v177_v1  ;;  %22 = vst.msk [vmem:[#allocation2 + $0x8] sm:$0xff] %vm20_vm1, %v177_v1 }
   0x2   :  { %138 = vmatpush3.bf16.msra.mxu0 %v150_v0 }
   0x3   :  { %139 = vmatprep.subr.bf16.mxu0 %v177_v1 }
   0x4   :  { %8 = vsyncpa [#allocation4], 0  ;;  %v152_v3 = vld [vmem:[%s233_s0] sm:$0xff]   ;;  %s179_s0 = smov [#allocation3]  }
   0x5   :  { %v133_v12 = vld [vmem:[%s235_s2] ss:$0 sm:$0xff]  ;;  %s118_s19 = sshll.u32 %s179_s0, 4  ;;  %s119_s19 = int_to_ptr.vmem [resolvable:$true] %s118_s19 }
   0x6   :  { %140 = vmatpush3.bf16.msra.mxu0 %v151_v2  ;;  %s153_s20 = scalar_lea.vmem %s119_s19, 256  ;;  %p158_p1 = scmp.lt.s32.totalorder %s119_s19, %s119_s19 }
   0x7   :  { %p154_p0 = scmp.ne.s32.totalorder %s119_s19, %s153_s20  ;;  %p159_p2 = scmp.lt.s32.totalorder %s153_s20, %s153_s20 }
   0x8   :  { %v23_v4 = vld [vmem:[#allocation2] sm:$0xff]  ;;  %v24_v6 = vld [vmem:[#allocation2 + $0x8] sm:$0xff] }
   0x9   :  { %142 = vmatmul.mubr.msk.bf16.vlgmr.msra.gmra.mrb[0].mxu0 %vm20_vm1, %v152_v3  ;;  %p160_p3 = por %p159_p2, %p158_p1 }
   0xb   :  { %p161_p4 = pnand %p160_p3, %p154_p0 }
  0xdc   :  { %v86_v5 = vpop.f32.mrb[0].mxu0 }
  0xdd   :  { %v93_v7 = vadd.f32 %v86_v5, %v23_v4  ;;  %v143_v8 = vpop.f32.mrb[1].mxu0 }
  0xde   :  { %v89_v9 = vpop.f32.mrb[2].mxu0 }
  0xdf   :  { %95 = vst.msk [vmem:[#allocation2] sm:$0xff] %vm20_vm1, %v93_v7  ;;  %v94_v10 = vadd.f32 %v89_v9, %v24_v6  ;;  %v144_v11 = vpop.f32.mrb[3].mxu0 }
  0xe1   :  { %96 = vst.msk [vmem:[#allocation2 + $0x8] sm:$0xff] %vm20_vm1, %v94_v10 }
  0xe6   :  { %v100_v13 = vld [vmem:[#allocation2] sm:$0xff] }
  0xe7   :  { %v109_v14 = vadd.f32 %v133_v12, %v100_v13 }
  0xe8   :  { %v101_v15 = vld [vmem:[#allocation2 + $0x8] sm:$0xff] }
  0xe9   :  { %v110_v16 = vadd.f32 %v133_v12, %v101_v15  ;;  %111 = vst.msk [vmem:[#allocation3] sm:$0xff] %vm20_vm1, %v109_v14 }
  0xeb   :  { %112 = vst.msk [vmem:[#allocation3 + $0x8] sm:$0xff] %vm20_vm1, %v110_v16 }
  0xec   :  { %164 = shalt.err (!%p161_p4)
}
  0xed   :  { %s165_s22 = scalar_lea.hbm %s236_s3, 256 }
  0xee   :  { %p166_p5 = scmp.ne.s32.totalorder %s236_s3, %s165_s22  ;;  %p169_p6 = scmp.lt.u32.totalorder %s165_s22, %s236_s3 }
  0xf0   :  { %p171_p7 = pnand %p169_p6, %p166_p5 }
  0xf2   :  { %174 = shalt.err (!%p171_p7)
}
  0xf3   :  { %s180_s27 = smov 128   ;;  %s181_s28 = smov 8  }
  0xf4   :  { %124 = dma.vmem_to_hbm [thread:$0]  %s119_s19, 256, %s236_s3, [#allocation4], %s180_s27, %s180_s27, %s181_s28  }
  0xf5   :  { %175 = dma.done.wait [#allocation4], 256  }
  0xf6   :  { %176 = vsyncadd [#allocation4], 4294967040 }
  0xf7   :  { %128 = vsyncpa [#allocation4], 1 }

// kernel: self_attention.4
= control target key start
LH: loop header
LB: loop body
LE: loop exit
PB: predicated region body
PF: predicated region fallthrough
CT: control target
= control target key end

     0   :  { %s1278_s12 = smov 0   ;;  %s1280_s13 = smov 0   ;;  %s1462_s0 = inlined_call_operand.vmem [shape: bf16[3,2,8,32], index: 0, kind: input, shape index: {}, may-alias: {0,1,2}]   ;;  %s1463_s1 = inlined_call_operand.vmem [shape: bf16[3,2,8,32], index: 1, kind: input, shape index: {}, may-alias: {0,1,2}]   ;;  %s1464_s2 = inlined_call_operand.vmem [shape: bf16[3,2,8,32], index: 2, kind: input, shape index: {}, may-alias: {0,1,2}]   ;;  %s1465_s3 = inlined_call_operand.vmem [shape: bf16[2,8,32], index: 3, kind: output, shape index: {}]  }
   0x1   :  { %s1282_s14 = smov 0  }
   0x2 LB: > { %s39_s15 = sadd.s32 1, %s1239_s13  ;;  %p1067_p0 = scmp.ge.s32.totalorder %s1243_s14, 1  ;;  %s1243_s14 = sphi %s1282_s14, %s13_s14   ;;  %s1239_s13 = sphi %s1280_s13, %s1467_s13   ;;  %s1235_s12 = sphi %s1278_s12, %s1466_s12  }
   0x3   : > { %p41_p1 = scmp.ge.s32.totalorder %s39_s15, 2  ;;  %p216_p2 = scmp.lt.s32.totalorder %s1243_s14, 3 }
   0x5   : > { %s1469_s15 = smov (%p41_p1, %s39_s15), 0  ;;  %p217_p3 = pnand %p1067_p0, %p216_p2 }
   0x6   : > { %p272_p4 = scmp.lt.s32.totalorder (!%p217_p3), %s1235_s12, 1  ;;  %v1245_v0 = vmov (!%p217_p3), 0.0   ;;  %vm1246_vm0 = vmmov (!%p217_p3), 0   ;;  %vm333_vm1 = vcmask (!%p217_p3), 64512   ;;  %vm328_vm2 = vcmask (!%p217_p3), 257024   ;;  %s1249_s23 = smov (!%p217_p3), 120  }
   0x7   : > { %220 = sbr.rel (%p217_p3) target bundleno = 1425 (0x591), region = 32  ;;  %1103 = vmatprep.subr.bf16.mxu0 (!%p217_p3), %v1245_v0  ;;  %1105 = vmatprep.mubr.msk.bf16.mxu0 (!%p217_p3), %vm1246_vm0, %v1245_v0  ;;  %vm319_vm3 = vcmask (!%p217_p3), 31744   ;;  %v1247_v8 = vmov (!%p217_p3), -inf   ;;  %v1248_v14 = vmov (!%p217_p3), 0   ;;  %s1250_s24 = smov (!%p217_p3), 112   ;;  %vm404_vm4 = vcmask (!%p217_p3), 7168  }
   0x8   : > { %1109 = vmatprep.subr.bf16.mxu1 (!%p217_p3), %v1245_v0  ;;  %1111 = vmatprep.mubr.msk.bf16.mxu1 (!%p217_p3), %vm1246_vm0, %v1245_v0  ;;  %320 = vst.msk [vmem:[#allocation3] sm:$0xff] (!%p217_p3), %vm319_vm3, %v1247_v8  ;;  %321 = vst.msk [vmem:[#allocation4] sm:$0xff] (!%p217_p3), %vm319_vm3, %v1245_v0  ;;  %s1251_s25 = smov (!%p217_p3), 104   ;;  %vm417_vm6 = vcmask (!%p217_p3), 1043456   ;;  %v1252_v57 = vmov (!%p217_p3), 1   ;;  %v1253_v58 = vmov (!%p217_p3), 2  }
   0x9   : > { %1188 = vset.pattern.permute.xlu0 (!%p217_p3), %v1248_v14  ;;  %1189 = vset.pattern.permute.xlu1 (!%p217_p3), %v1252_v57  ;;  %vm544_vm7 = vcmask (!%p217_p3), 15368   ;;  %vm687_vm9 = vcmask (!%p217_p3), 23568   ;;  %vm322_vm10 = vcmask (!%p217_p3), 261120   ;;  %vm827_vm12 = vcmask (!%p217_p3), 31768   ;;  %s1255_s29 = smov (!%p217_p3), 8   ;;  %s1256_s30 = smov (!%p217_p3), 16  }
   0xa   : > { %323 = vst.msk [vmem:[#allocation5] sm:$0xff] (!%p217_p3), %vm322_vm10, %v1245_v0  ;;  %s1257_s4 = smov (!%p217_p3), 24   ;;  %vm610_vm14 = vcmask (!%p217_p3), 130112   ;;  %vm750_vm15 = vcmask (!%p217_p3), 195712   ;;  %vm921_vm3 = vcmask (!%p217_p3), 130048  }
   0xe   : > { %s1471_s12 = smov (!%p272_p4, %s1235_s12), 1 }
   0xf   : > { %s1302_s16 = sshll.u32 %s1471_s12, 2  ;;  %v1327_v17 = vld [vmem:[#allocation3] sm:$0xff] }
  0x10   : > { %s281_s19 = scalar_lea.vmem %s1462_s0, %s1302_s16  ;;  %s998_s22 = scalar_lea.vmem %s1463_s1, %s1302_s16 }
  0x11   : > { %v324_v1 = vld [vmem:[%s281_s19] sm:$0xf]  ;;  %v1072_v2 = vld [vmem:[%s998_s22 + $0x8] sm:$0xf]  ;;  %s1003_s28 = scalar_lea.vmem %s1464_s2, %s1302_s16  ;;  %s313_s7 = scalar_lea.vmem %s1465_s3, %s1302_s16 }
  0x12   : > { %v325_v3 = vunpack.c.l.bf16 %v324_v1  ;;  %v338_v4 = vsel %vm333_vm1, %v1072_v2, 0  ;;  %v1077_v15 = vcombine.low %v1072_v2, %v1072_v2  ;;  %v1340_v22 = vld [vmem:[%s1003_s28 + $0x10] sm:$0xf] }
  0x13   : > { %1104 = vmatpush3.bf16.xpose.msra.mxu0 %v338_v4  ;;  %v419_v23 = vsel %vm417_vm6, %v1340_v22, 0  ;;  %v1079_v1 = vcombine.low %v1340_v22, %v1340_v22 }
  0x14   : > { %v326_v5 = vmul.f32 0.35355338, %v325_v3  ;;  %1121 = vmatprep.subr.bf16.mxu0 %v1245_v0  ;;  %472 = vrot.lane.b32.xlu1 %v1077_v15, %s1249_s23 }
  0x15   : > { %1110 = vmatpush3.bf16.msra.mxu1 %v419_v23 }
  0x16   : > { %v327_v6 = vpack.c.bf16 %v326_v5, %v326_v5  ;;  %1115 = vmatprep.subr.bf16.mxu1 %v1245_v0  ;;  %v1254_v5 = vmov 3  }
  0x18   : > { %329 = vst.msk [vmem:[#allocation2] sm:$0xf] %vm328_vm2, %v327_v6 }
  0x1f   : > { %v330_v7 = vld [vmem:[#allocation2] sm:$0xf] }
  0x20   : > { %1106 = vmatmul.mubr.msk.bf16.vlgmr.msra.gmra.mrb[0].mxu0 %vm333_vm1, %v330_v7  ;;  %v1076_v16 = vcombine.low %v330_v7, %v330_v7 }
  0x21   : > { %1123 = vmatprep.mubr.msk.bf16.mxu0 %vm1246_vm0, %v1245_v0 }
  0x22   : > { %467 = vrot.lane.b32.xlu1 %v1076_v16, %s1249_s23 }
  0x26   : > { %615 = vrot.lane.b32.xlu1 %v1077_v15, %s1250_s24 }
  0x2a   : > { %613 = vrot.lane.b32.xlu1 %v1076_v16, %s1250_s24 }
  0x2e   : > { %755 = vrot.lane.b32.xlu1 %v1077_v15, %s1251_s25 }
  0x32   : > { %753 = vrot.lane.b32.xlu1 %v1076_v16, %s1251_s25 }
  0x86   : > { %v473_v27 = vpop.permute.xlu1 %472 }
  0x87   : > { %v478_v30 = vsel %vm333_vm1, %v473_v27, 0  ;;  %v406_v27 = vld [vmem:[#allocation5] sm:$0xff] }
  0x94   : > { %v468_v28 = vpop.permute.xlu1 %467 }
  0x98   : > { %v616_v32 = vpop.permute.xlu1 %615 }
  0x99   : > { %v621_v34 = vsel %vm333_vm1, %v616_v32, 0 }
  0x9c   : > { %v614_v33 = vpop.permute.xlu1 %613 }
  0xa0   : > { %v756_v35 = vpop.permute.xlu1 %755 }
  0xa1   : > { %v761_v36 = vsel %vm333_vm1, %v756_v35, 0 }
  0xa4   : > { %v754_v37 = vpop.permute.xlu1 %753 }
  0xf3   : > { %v374_v9 = vpop.f32.mrb[0].mxu0 }
  0xf4   : > { %v1107_v10 = vpop.f32.mrb[1].mxu0  ;;  %v381_v11 = vsel %vm333_vm1, %v374_v9, -inf }
  0xf5   : > { %382 = vmax.xlane.f32.xlu0 %v381_v11  ;;  %v377_v12 = vpop.f32.mrb[2].mxu0 }
  0xf6   : > { %v1108_v13 = vpop.f32.mrb[3].mxu0 }
 0x182   : > { %v383_v18 = vpop.xlane.xlu0 %382 }
 0x183   : > { %v384_v19 = vmax.f32 %v1327_v17, %v383_v18 }
 0x185   : > { %463 = vst.msk [vmem:[#allocation3] sm:$0xff] %vm404_vm4, %v384_v19  ;;  %vm385_vm5 = vcmp.eq.f32.partialorder %v384_v19, -inf }
 0x186   : > { %v1331_v20 = vsel %vm385_vm5, 0.0, %v384_v19 }
 0x187   : > { %392 = vperm.xlu0 %1188, %v1331_v20   ;;  %v387_v21 = vsub.f32 %v1327_v17, %v1331_v20 }
 0x189   : > { %v388_v63 = vmul.f32 1.442695, %v387_v21 }
 0x18b   : > { %1190 = vset.pattern.permute.xlu0 %v1253_v58 }
 0x18c   : > { %v520_v59 = vld [vmem:[#allocation3] sm:$0xff] }
 0x206   : > { %v393_v24 = vpop.permute.xlu0 %392 }
 0x207   : > { %v395_v25 = vsub.f32 %v374_v9, %v393_v24 }
 0x209   : > { %v396_v26 = vmul.f32 1.442695, %v395_v25 }
 0x20b   : > { %1203 = vpow2.f32 %v396_v26 }
 0x20c   : > { %1205 = vpow2.f32 %v388_v63 }
 0x215   : > { %v1345_v29 = vpop.eup %1203 }
 0x216   : > { %v413_v31 = vpack.c.bf16 %v1345_v29, %v1345_v29  ;;  %v1394_v10 = vpop.eup %1205  ;;  %v400_v16 = vsel %vm333_vm1, %v1345_v29, 0.0 }
 0x218   : > { %1112 = vmatmul.mubr.msk.bf16.vlgmr.msra.gmra.mrb[0].mxu1 %vm333_vm1, %v413_v31 }
 0x219   : > { %1116 = vmatpush3.bf16.xpose.msra.mxu1 %v478_v30  ;;  %1117 = vmatprep.mubr.msk.bf16.mxu1 %vm1246_vm0, %v1245_v0 }
 0x21a   : > { %1127 = vmatprep.subr.bf16.mxu1 %v1245_v0 }
 0x220   : > { %1118 = vmatmul.mubr.msk.bf16.vlgmr.msra.gmra.mrb[4].mxu1 %vm333_vm1, %v468_v28 }
 0x221   : > { %1128 = vmatpush3.bf16.xpose.msra.mxu1 %v621_v34  ;;  %1129 = vmatprep.mubr.msk.bf16.mxu1 %vm1246_vm0, %v1245_v0 }
 0x222   : > { %1139 = vmatprep.subr.bf16.mxu1 %v1245_v0 }
 0x228   : > { %1130 = vmatmul.mubr.msk.bf16.vlgmr.msra.gmra.mrb[8].mxu1 %vm333_vm1, %v614_v33 }
 0x229   : > { %1140 = vmatpush3.bf16.xpose.msra.mxu1 %v761_v36  ;;  %1141 = vmatprep.mubr.msk.bf16.mxu1 %vm1246_vm0, %v1245_v0 }
 0x230   : > { %1142 = vmatmul.mubr.msk.bf16.vlgmr.msra.gmra.mrb[12].mxu1 %vm333_vm1, %v754_v37 }
 0x2eb   : > { %v1364_v38 = vpop.f32.mrb[0].mxu1 }
 0x2ec   : > { %v1113_v39 = vpop.f32.mrb[1].mxu1 }
 0x2ed   : > { %v458_v40 = vpop.f32.mrb[2].mxu1 }
 0x2ee   : > { %v1114_v41 = vpop.f32.mrb[3].mxu1 }
 0x2f3   : > { %v1366_v42 = vpop.f32.mrb[4].mxu1 }
 0x2f4   : > { %v1119_v43 = vpop.f32.mrb[5].mxu1  ;;  %v521_v44 = vsel %vm333_vm1, %v1366_v42, -inf }
 0x2f5   : > { %522 = vmax.xlane.f32.xlu1 %v521_v44  ;;  %v517_v45 = vpop.f32.mrb[6].mxu1 }
 0x2f6   : > { %v1120_v46 = vpop.f32.mrb[7].mxu1 }
 0x2fb   : > { %v1370_v47 = vpop.f32.mrb[8].mxu1 }
 0x2fc   : > { %v1131_v48 = vpop.f32.mrb[9].mxu1  ;;  %v664_v49 = vsel %vm333_vm1, %v1370_v47, -inf }
 0x2fd   : > { %665 = vmax.xlane.f32.xlu0 %v664_v49  ;;  %v660_v50 = vpop.f32.mrb[10].mxu1  ;;  %v398_v49 = vld [vmem:[#allocation4] sm:$0xff] }
 0x2fe   : > { %v1132_v51 = vpop.f32.mrb[11].mxu1  ;;  %v399_v50 = vmul.f32 %v1394_v10, %v398_v49 }
 0x303   : > { %v1374_v52 = vpop.f32.mrb[12].mxu1 }
 0x304   : > { %v1143_v53 = vpop.f32.mrb[13].mxu1  ;;  %v804_v54 = vsel %vm333_vm1, %v1374_v52, -inf }
 0x305   : > { %v800_v55 = vpop.f32.mrb[14].mxu1  ;;  %805 = vmax.xlane.f32.xlu1 %v804_v54 }
 0x306   : > { %v1144_v56 = vpop.f32.mrb[15].mxu1 }
 0x382   : > { %v523_v60 = vpop.xlane.xlu1 %522 }
 0x383   : > { %v524_v61 = vmax.f32 %v520_v59, %v523_v60 }
 0x385   : > { %612 = vst.msk [vmem:[#allocation3] sm:$0xff] %vm544_vm7, %v524_v61  ;;  %vm525_vm8 = vcmp.eq.f32.partialorder %v524_v61, -inf }
 0x386   : > { %v526_v62 = vsel %vm525_vm8, 0.0, %v524_v61 }
 0x387   : > { %v527_v2 = vsub.f32 %v520_v59, %v526_v62  ;;  %532 = vperm.xlu1 %1189, %v526_v62  }
 0x389   : > { %v528_v17 = vmul.f32 1.442695, %v527_v2 }
 0x38a   : > { %v666_v4 = vpop.xlane.xlu0 %665 }
 0x38b   : > { %557 = vrot.lane.b32.xlu1 %v1079_v1, %s1249_s23  ;;  %1207 = vpow2.f32 %v528_v17 }
 0x38c   : > { %v1387_v3 = vld [vmem:[#allocation3] sm:$0xff]  ;;  %1191 = vset.pattern.permute.xlu1 %v1254_v5 }
 0x38d   : > { %v667_v6 = vmax.f32 %v1387_v3, %v666_v4 }
 0x38f   : > { %752 = vst.msk [vmem:[#allocation3] sm:$0xff] %vm687_vm9, %v667_v6  ;;  %vm668_vm11 = vcmp.eq.f32.partialorder %v667_v6, -inf }
 0x390   : > { %v669_v7 = vsel %vm668_vm11, 0.0, %v667_v6 }
 0x391   : > { %675 = vperm.xlu0 %1190, %v669_v7   ;;  %v670_v8 = vsub.f32 %v1387_v3, %v669_v7 }
 0x392   : > { %v806_v9 = vpop.xlane.xlu1 %805 }
 0x393   : > { %v671_v43 = vmul.f32 1.442695, %v670_v8 }
 0x395   : > { %1192 = vset.pattern.permute.xlu0 %v1248_v14  ;;  %v1208_v18 = vpop.eup %1207 }
 0x396   : > { %v1397_v11 = vld [vmem:[#allocation3] sm:$0xff]  ;;  %409 = vperm.xlu0 %1192, %v1394_v10  }
 0x397   : > { %v807_v12 = vmax.f32 %v1397_v11, %v806_v9 }
 0x399   : > { %892 = vst.msk [vmem:[#allocation3] sm:$0xff] %vm827_vm12, %v807_v12  ;;  %vm808_vm13 = vcmp.eq.f32.partialorder %v807_v12, -inf }
 0x39a   : > { %v1402_v13 = vsel %vm808_vm13, 0.0, %v807_v12  ;;  %1195 = vset.pattern.permute.xlu0 %v1254_v5 }
 0x39b   : > { %815 = vperm.xlu1 %1191, %v1402_v13   ;;  %v810_v15 = vsub.f32 %v1397_v11, %v1402_v13 }
 0x39d   : > { %v811_v56 = vmul.f32 1.442695, %v810_v15 }
 0x39f   : > { %697 = vrot.lane.b32.xlu1 %v1079_v1, %s1250_s24 }
 0x3a0   : > { %1193 = vset.pattern.permute.xlu1 %v1252_v57 }
 0x3a3   : > { %837 = vrot.lane.b32.xlu1 %v1079_v1, %s1251_s25 }
 0x3c7   : > { %401 = vadd.xlane.f32.xlu1 %v400_v16 }
 0x3d8   : > { %549 = vperm.xlu1 %1193, %v1208_v18  }
 0x3dc   : > { %1194 = vset.pattern.permute.xlu1 %v1253_v58 }
 0x406   : > { %v533_v19 = vpop.permute.xlu1 %532 }
 0x407   : > { %v535_v20 = vsub.f32 %v1366_v42, %v533_v19 }
 0x409   : > { %v536_v21 = vmul.f32 1.442695, %v535_v20 }
 0x40a   : > { %v558_v22 = vpop.permute.xlu1 %557 }
 0x40b   : > { %1209 = vpow2.f32 %v536_v21  ;;  %v563_v23 = vsel %vm417_vm6, %v558_v22, 0 }
 0x40c   : > { %1122 = vmatpush3.bf16.msra.mxu0 %v563_v23 }
 0x40d   : > { %1133 = vmatprep.subr.bf16.mxu0 %v1245_v0 }
 0x410   : > { %v676_v24 = vpop.permute.xlu0 %675 }
 0x411   : > { %v678_v25 = vsub.f32 %v1370_v47, %v676_v24 }
 0x413   : > { %v679_v26 = vmul.f32 1.442695, %v678_v25 }
 0x415   : > { %v1210_v28 = vpop.eup %1209  ;;  %1211 = vpow2.f32 %v679_v26  ;;  %v410_v29 = vpop.permute.xlu0 %409 }
 0x416   : > { %v412_v30 = vmul.f32 %v410_v29, %v406_v27  ;;  %v540_v31 = vsel %vm333_vm1, %v1210_v28, 0.0  ;;  %v553_v32 = vpack.c.bf16 %v1210_v28, %v1210_v28 }
 0x417   : > { %541 = vadd.xlane.f32.xlu0 %v540_v31 }
 0x418   : > { %v461_v33 = vadd.f32 %v1364_v38, %v412_v30  ;;  %1124 = vmatmul.mubr.msk.bf16.vlgmr.msra.gmra.mrb[4].mxu0 %vm333_vm1, %v553_v32 }
 0x419   : > { %1135 = vmatprep.mubr.msk.bf16.mxu0 %vm1246_vm0, %v1245_v0 }
 0x41a   : > { %462 = vst.msk [vmem:[#allocation5] sm:$0xff] %vm333_vm1, %v461_v33  ;;  %v816_v34 = vpop.permute.xlu1 %815 }
 0x41b   : > { %v818_v35 = vsub.f32 %v1374_v52, %v816_v34 }
 0x41d   : > { %v819_v36 = vmul.f32 1.442695, %v818_v35 }
 0x41e   : > { %v698_v37 = vpop.permute.xlu1 %697 }
 0x41f   : > { %v1212_v39 = vpop.eup %1211  ;;  %1213 = vpow2.f32 %v819_v36  ;;  %v703_v40 = vsel %vm417_vm6, %v698_v37, 0 }
 0x420   : > { %1134 = vmatpush3.bf16.msra.mxu0 %v703_v40  ;;  %v683_v41 = vsel %vm333_vm1, %v1212_v39, 0.0  ;;  %v696_v38 = vpack.c.bf16 %v1212_v39, %v1212_v39  ;;  %1215 = vpow2.f32 %v671_v43 }
 0x421   : > { %684 = vadd.xlane.f32.xlu1 %v683_v41  ;;  %1145 = vmatprep.subr.bf16.mxu0 %v1245_v0  ;;  %1217 = vpow2.f32 %v811_v56  ;;  %v546_v20 = vld [vmem:[#allocation5] sm:$0xff] }
 0x422   : > { %v838_v42 = vpop.permute.xlu1 %837 }
 0x423   : > { %1136 = vmatmul.mubr.msk.bf16.vlgmr.msra.gmra.mrb[8].mxu0 %vm333_vm1, %v696_v38  ;;  %v843_v44 = vsel %vm417_vm6, %v838_v42, 0 }
 0x424   : > { %1146 = vmatpush3.bf16.msra.mxu0 %v843_v44  ;;  %1147 = vmatprep.mubr.msk.bf16.mxu0 %vm1246_vm0, %v1245_v0  ;;  %vm890_vm0 = vcmask 261312  }
 0x429   : > { %v1214_v45 = vpop.eup %1213 }
 0x42a   : > { %v823_v46 = vsel %vm333_vm1, %v1214_v45, 0.0  ;;  %v836_v47 = vpack.c.bf16 %v1214_v45, %v1214_v45  ;;  %v1216_v48 = vpop.eup %1215 }
 0x42b   : > { %824 = vadd.xlane.f32.xlu0 %v823_v46  ;;  %v1218_v63 = vpop.eup %1217 }
 0x42c   : > { %1148 = vmatmul.mubr.msk.bf16.vlgmr.msra.gmra.mrb[12].mxu0 %vm333_vm1, %v836_v47 }
 0x432   : > { %692 = vperm.xlu1 %1194, %v1216_v48  }
 0x436   : > { %1196 = vset.pattern.permute.xlu1 %v1248_v14 }
 0x454   : > { %v402_v51 = vpop.xlane.xlu1 %401 }
 0x455   : > { %v403_v52 = vadd.f32 %v402_v51, %v399_v50 }
 0x457   : > { %405 = vst.msk [vmem:[#allocation4] sm:$0xff] %vm404_vm4, %v403_v52  ;;  %vm923_vm4 = vcmask 195584  }
 0x458   : > { %v550_v59 = vpop.permute.xlu1 %549 }
 0x459   : > { %v552_v21 = vmul.f32 %v550_v59, %v546_v20 }
 0x45e   : > { %v538_v0 = vld [vmem:[#allocation4] sm:$0xff] }
 0x45f   : > { %v539_v53 = vmul.f32 %v1208_v18, %v538_v0 }
 0x4a4   : > { %v542_v54 = vpop.xlane.xlu0 %541 }
 0x4a5   : > { %v543_v55 = vadd.f32 %v542_v54, %v539_v53 }
 0x4a7   : > { %545 = vst.msk [vmem:[#allocation4] sm:$0xff] %vm544_vm7, %v543_v55 }
 0x4ae   : > { %v681_v60 = vld [vmem:[#allocation4] sm:$0xff]  ;;  %v685_v61 = vpop.xlane.xlu1 %684 }
 0x4af   : > { %v682_v14 = vmul.f32 %v1216_v48, %v681_v60 }
 0x4b1   : > { %v686_v62 = vadd.f32 %v685_v61, %v682_v14 }
 0x4b2   : > { %v693_v24 = vpop.permute.xlu1 %692 }
 0x4b3   : > { %688 = vst.msk [vmem:[#allocation4] sm:$0xff] %vm687_vm9, %v686_v62 }
 0x4b8   : > { %v825_v3 = vpop.xlane.xlu0 %824 }
 0x4ba   : > { %v821_v1 = vld [vmem:[#allocation4] sm:$0xff] }
 0x4bb   : > { %v822_v2 = vmul.f32 %v1218_v63, %v821_v1 }
 0x4bd   : > { %v826_v4 = vadd.f32 %v825_v3, %v822_v2 }
 0x4bf   : > { %828 = vst.msk [vmem:[#allocation4] sm:$0xff] %vm827_vm12, %v826_v4 }
 0x4c6   : > { %v897_v6 = vld [vmem:[#allocation4] sm:$0xff] }
 0x4c7   : > { %1219 = vrcp.f32 %v897_v6 }
 0x4d1   : > { %v1220_v7 = vpop.eup %1219 }
 0x4d2   : > { %901 = vperm.xlu1 %1196, %v1220_v7  }
 0x4d6   : > { %1198 = vset.pattern.permute.xlu1 %v1253_v58 }
 0x4d7   : > { %911 = vperm.xlu1 %1198, %v1220_v7  }
 0x4db   : > { %1199 = vset.pattern.permute.xlu1 %v1254_v5 }
 0x4dc   : > { %916 = vperm.xlu1 %1199, %v1220_v7  }
 0x4eb   : > { %v599_v8 = vpop.f32.mrb[4].mxu0 }
 0x4ec   : > { %606 = vrot.lane.b32.xlu0 %v599_v8, %s1255_s29  ;;  %v1125_v9 = vpop.f32.mrb[5].mxu0 }
 0x4ed   : > { %v602_v10 = vpop.f32.mrb[6].mxu0 }
 0x4ee   : > { %v1126_v11 = vpop.f32.mrb[7].mxu0 }
 0x4f6   : > { %v739_v12 = vpop.f32.mrb[8].mxu0 }
 0x4f7   : > { %746 = vrot.lane.b32.xlu0 %v739_v12, %s1256_s30  ;;  %v1137_v13 = vpop.f32.mrb[9].mxu0 }
 0x4f8   : > { %v742_v15 = vpop.f32.mrb[10].mxu0 }
 0x4f9   : > { %v1138_v16 = vpop.f32.mrb[11].mxu0 }
 0x4fb   : > { %832 = vperm.xlu0 %1195, %v1218_v63  }
 0x4ff   : > { %v879_v17 = vpop.f32.mrb[12].mxu0  ;;  %1197 = vset.pattern.permute.xlu0 %v1252_v57 }
 0x500   : > { %886 = vrot.lane.b32.xlu0 %v879_v17, %s1257_s4  ;;  %v1149_v58 = vpop.f32.mrb[13].mxu0 }
 0x501   : > { %v882_v18 = vpop.f32.mrb[14].mxu0 }
 0x502   : > { %v1150_v19 = vpop.f32.mrb[15].mxu0 }
 0x504   : > { %906 = vperm.xlu0 %1197, %v1220_v7  }
 0x508   : > { %1200 = vset.pattern.permute.xlu0 %v1254_v5 }
 0x551   : > { %v902_v31 = vpop.permute.xlu1 %901 }
 0x556   : > { %v912_v33 = vpop.permute.xlu1 %911 }
 0x55b   : > { %v917_v40 = vpop.permute.xlu1 %916 }
 0x55e   : > { %v607_v22 = vpop.permute.xlu0 %606 }
 0x55f   : > { %v609_v23 = vadd.f32 %v607_v22, %v552_v21 }
 0x561   : > { %611 = vst.msk [vmem:[#allocation5] sm:$0xff] %vm610_vm14, %v609_v23 }
 0x568   : > { %v689_v25 = vld [vmem:[#allocation5] sm:$0xff] }
 0x569   : > { %v695_v26 = vmul.f32 %v693_v24, %v689_v25  ;;  %v747_v27 = vpop.permute.xlu0 %746 }
 0x56b   : > { %v749_v57 = vadd.f32 %v747_v27, %v695_v26 }
 0x56d   : > { %751 = vst.msk [vmem:[#allocation5] sm:$0xff] %vm750_vm15, %v749_v57 }
 0x574   : > { %v829_v29 = vld [vmem:[#allocation5] sm:$0xff] }
 0x57a   : > { %v833_v28 = vpop.permute.xlu0 %832 }
 0x57b   : > { %v835_v30 = vmul.f32 %v833_v28, %v829_v29 }
 0x57e   : > { %v887_v5 = vpop.permute.xlu0 %886 }
 0x57f   : > { %v889_v32 = vadd.f32 %v887_v5, %v835_v30 }
 0x581   : > { %891 = vst.msk [vmem:[#allocation5] sm:$0xff] %vm890_vm0, %v889_v32 }
 0x583   : > { %v907_v35 = vpop.permute.xlu0 %906 }
 0x588   : > { %v896_v34 = vld [vmem:[#allocation5] sm:$0xff] }
 0x589   : > { %v904_v36 = vmul.f32 %v902_v31, %v896_v34  ;;  %v914_v37 = vmul.f32 %v912_v33, %v896_v34  ;;  %v909_v39 = vmul.f32 %v907_v35, %v896_v34  ;;  %v919_v41 = vmul.f32 %v917_v40, %v896_v34 }
 0x58b   : > { %v920_v38 = vsel %vm333_vm1, %v904_v36, %v909_v39 }
 0x58c   : > { %v922_v42 = vsel %vm921_vm3, %v920_v38, %v914_v37 }
 0x58d   : > { %v924_v43 = vsel %vm923_vm4, %v922_v42, %v919_v41 }
 0x58e   : > { %v925_v44 = vpack.c.bf16 %v924_v43, %v924_v43 }
 0x590   : > { %927 = vst.msk [vmem:[%s313_s7] sm:$0xf] %vm328_vm2, %v925_v44 }
 0x591 PF: > { %s13_s14 = sadd.s32 1, %s1243_s14   ;;  %s1466_s12 = smov %s1239_s13 }
 0x592   : > { %p10_p5 = scmp.ge.s32.totalorder %s13_s14, 4   ;;  %s1467_s13 = smov %s1469_s15 }
 0x594   :  { %12 = sbr.rel (!%p10_p5) target bundleno = 2 (0x2), region = 76 }

</bundles_post_ra>
